<compile_context>
chip_gen: v6e
topology: v6e:2x2x1
jax: 0.10.0
libtpu: 0.0.40
codegen_flags: <defaults>
</compile_context>

<pallas_src>
import jax
import jax.numpy as jnp
from jax import lax
from jax.experimental import pallas as pl
from jax.experimental.pallas import tpu as pltpu

EPS = 1e-5


# ------------------------------------------------------------------ kernel --
def _make_bottleneck_kernel(*, stride, ho, wo, has_proj):
    s = stride
    m = ho * wo                 # rows of the (flattened) output spatial grid
    padr = wo + 8               # zero halo rows above/below each parity plane

    def kernel(*refs):
        if has_proj:
            (xp_ref, mask_ref, w1_ref, s1_ref, b1_ref,
             w2_ref, s2_ref, b2_ref, w3_ref, s3_ref, b3_ref,
             ws_ref, ss_ref, bs_ref,
             o_ref, h1_ref, acc_ref) = refs
        else:
            (xp_ref, mask_ref, w1_ref, s1_ref, b1_ref,
             w2_ref, s2_ref, b2_ref, w3_ref, s3_ref, b3_ref,
             o_ref, h1_ref, acc_ref) = refs

        f32 = jnp.float32

        # ---- stage 1: 1x1 conv + BN + ReLU, one matmul per stride-parity
        #      plane of x; result stored (bf16) into the halo'd VMEM scratch.
        h1_ref[...] = jnp.zeros_like(h1_ref)          # zero halo rows
        for q in range(s * s):
            xq = xp_ref[0, pl.ds(q * m, m), :]                        # (M, Cin) bf16
            h = jnp.dot(xq, w1_ref[...], preferred_element_type=f32)
            h = jnp.maximum(h * s1_ref[...] + b1_ref[...], 0.0)
            h1_ref[q, pl.ds(padr, m), :] = h.astype(h1_ref.dtype)

        # ---- stage 2: 3x3 conv (stride s, pad 1) + BN + ReLU.
        #      tap (ky,kx) of output row r=(yo*Wo+xo) needs
        #      h1[s*yo+ky-1, s*xo+kx-1]  ==  plane(qy,qx)[yo+dy, xo+dx]
        #      which is a contiguous flat shift of the plane by dy*Wo+dx rows;
        #      out-of-image columns are killed by a precomputed mask, rows fall
        #      into the zero halo.
        acc_ref[...] = jnp.zeros_like(acc_ref)
        for ky in range(3):
            for kx in range(3):
                qy = (ky - 1) % s
                qx = (kx - 1) % s
                dy = (ky - 1 - qy) // s
                dx = (kx - 1 - qx) // s
                start = padr + dy * wo + dx
                slab = h1_ref[qy * s + qx, pl.ds(start, m), :]        # (M, Cmid) bf16
                contrib = jnp.dot(slab, w2_ref[ky * 3 + kx],
                                  preferred_element_type=f32)
                if dx != 0:
                    contrib = contrib * mask_ref[dx + 1]              # (M, 1) f32
                acc_ref[...] += contrib

        h2 = jnp.maximum(acc_ref[...] * s2_ref[...] + b2_ref[...], 0.0)
        h2 = h2.astype(w3_ref.dtype)                                  # bf16 for MXU

        # ---- stage 3: final 1x1 conv + BN + shortcut + ReLU (all fused).
        y = jnp.dot(h2, w3_ref[...], preferred_element_type=f32)
        y = y * s3_ref[...] + b3_ref[...]

        xs = xp_ref[0, pl.ds(0, m), :]                 # plane (0,0) == x[::s, ::s]
        if has_proj:
            sc = jnp.dot(xs, ws_ref[...], preferred_element_type=f32)
            sc = sc * ss_ref[...] + bs_ref[...]
        else:
            sc = xs.astype(f32)                        # identity shortcut

        o_ref[0] = jnp.maximum(y + sc, 0.0).astype(o_ref.dtype)

    return kernel


# ----------------------------------------------------------------- wrapper --
def _fold_bn(bn):
    gamma, beta, mean, var = bn
    s = gamma * lax.rsqrt(var + EPS)
    return s.reshape(1, -1).astype(jnp.float32), \
        (beta - mean * s).reshape(1, -1).astype(jnp.float32)


def bottleneck_pallas(x_nchw, p, stride):
    n, cin, h, w = x_nchw.shape
    s = stride
    assert h % s == 0 and w % s == 0, "spatial dims must be divisible by stride"
    ho, wo = h // s, w // s
    m = ho * wo
    cmid = p["w1"].shape[0]
    cexp = p["w3"].shape[0]
    has_proj = "ws" in p
    padr = wo + 8

    # ---- glue (pure layout plumbing in XLA) --------------------------------
    x = jnp.transpose(x_nchw, (0, 2, 3, 1))                      # NCHW -> NHWC
    planes = [x[:, qy::s, qx::s, :] for qy in range(s) for qx in range(s)]
    xp = jnp.stack(planes, axis=1).reshape(n, s * s * m, cin).astype(jnp.bfloat16)

    w1 = jnp.transpose(p["w1"][:, :, 0, 0]).astype(jnp.bfloat16)           # (Cin, Cmid)
    w2 = jnp.transpose(p["w2"], (2, 3, 1, 0)).reshape(9, cmid, cmid) \
            .astype(jnp.bfloat16)                                          # (9, Cmid, Cmid)
    w3 = jnp.transpose(p["w3"][:, :, 0, 0]).astype(jnp.bfloat16)           # (Cmid, Cexp)
    s1, b1 = _fold_bn(p["bn1"])
    s2, b2 = _fold_bn(p["bn2"])
    s3, b3 = _fold_bn(p["bn3"])

    # column-validity masks for tap shifts dx in {-1, 0, +1}
    xo_idx = jnp.arange(m, dtype=jnp.int32) % wo
    masks = jnp.stack([((xo_idx + d >= 0) & (xo_idx + d < wo)).astype(jnp.float32)
                       for d in (-1, 0, 1)], axis=0)[:, :, None]           # (3, M, 1)

    inputs = [xp, masks, w1, s1, b1, w2, s2, b2, w3, s3, b3]
    in_specs = [
        pl.BlockSpec((1, s * s * m, cin), lambda i: (i, 0, 0)),
        pl.BlockSpec((3, m, 1), lambda i: (0, 0, 0)),
        pl.BlockSpec((cin, cmid), lambda i: (0, 0)),
        pl.BlockSpec((1, cmid), lambda i: (0, 0)),
        pl.BlockSpec((1, cmid), lambda i: (0, 0)),
        pl.BlockSpec((9, cmid, cmid), lambda i: (0, 0, 0)),
        pl.BlockSpec((1, cmid), lambda i: (0, 0)),
        pl.BlockSpec((1, cmid), lambda i: (0, 0)),
        pl.BlockSpec((cmid, cexp), lambda i: (0, 0)),
        pl.BlockSpec((1, cexp), lambda i: (0, 0)),
        pl.BlockSpec((1, cexp), lambda i: (0, 0)),
    ]
    if has_proj:
        ws = jnp.transpose(p["ws"][:, :, 0, 0]).astype(jnp.bfloat16)       # (Cin, Cexp)
        ss, bs = _fold_bn(p["bns"])
        inputs += [ws, ss, bs]
        in_specs += [pl.BlockSpec((cin, cexp), lambda i: (0, 0)),
                     pl.BlockSpec((1, cexp), lambda i: (0, 0)),
                     pl.BlockSpec((1, cexp), lambda i: (0, 0))]

    kernel = _make_bottleneck_kernel(stride=s, ho=ho, wo=wo, has_proj=has_proj)

    out2d = pl.pallas_call(
        kernel,
        out_shape=jax.ShapeDtypeStruct((n, m, cexp), jnp.float32),
        grid_spec=pltpu.PrefetchScalarGridSpec(
            num_scalar_prefetch=0,
            grid=(n,),
            in_specs=in_specs,
            out_specs=pl.BlockSpec((1, m, cexp), lambda i: (i, 0, 0)),
            scratch_shapes=[
                pltpu.VMEM((s * s, m + 2 * padr, cmid), jnp.bfloat16),  # halo'd h1 planes
                pltpu.VMEM((m, cmid), jnp.float32),                      # 3x3 accumulator
            ]),
        compiler_params=pltpu.CompilerParams(
            dimension_semantics=("parallel",),
            vmem_limit_bytes=32 * 1024 * 1024),
    )(*inputs)

    out = out2d.reshape(n, ho, wo, cexp)
    return jnp.transpose(out, (0, 3, 1, 2))                      # NHWC -> NCHW


# --------------------------------------------------------------- reference --
def bottleneck_ref(x, p, stride):
    def conv(x, w, s, pad):
        return lax.conv_general_dilated(
            x, w, (s, s), pad, dimension_numbers=("NCHW", "OIHW", "NCHW"),
            precision=lax.Precision.HIGHEST)

    def bn(x, prm):
        g, b, m, v = prm
        sc = g * lax.rsqrt(v + EPS)
        return x * sc[None, :, None, None] + (b - m * sc)[None, :, None, None]

    h = jax.nn.relu(bn(conv(x, p["w1"], 1, "VALID"), p["bn1"]))
    h = jax.nn.relu(bn(conv(h, p["w2"], stride, [(1, 1), (1, 1)]), p["bn2"]))
    h = bn(conv(h, p["w3"], 1, "VALID"), p["bn3"])
    if "ws" in p:
        sc = bn(conv(x, p["ws"], stride, "VALID"), p["bns"])
    else:
        sc = x
    return jax.nn.relu(h + sc)


# ------------------------------------------------------------------- setup --
def init_params(key, cin, cmid, stride):
    cexp = cmid * 4
    ks = jax.random.split(key, 8)

    def conv_w(k, o, i, kh, kw):
        fan_in = i * kh * kw
        return (jax.random.normal(k, (o, i, kh, kw), jnp.float32)
                / jnp.sqrt(jnp.float32(fan_in)))

    def bn_p(k, c):
        k1, k2, k3, k4 = jax.random.split(k, 4)
        return (1.0 + 0.1 * jax.random.normal(k1, (c,), jnp.float32),
                0.1 * jax.random.normal(k2, (c,), jnp.float32),
                0.1 * jax.random.normal(k3, (c,), jnp.float32),
                jax.random.uniform(k4, (c,), jnp.float32, 0.5, 1.5))

    p = dict(w1=conv_w(ks[0], cmid, cin, 1, 1), bn1=bn_p(ks[1], cmid),
             w2=conv_w(ks[2], cmid, cmid, 3, 3), bn2=bn_p(ks[3], cmid),
             w3=conv_w(ks[4], cexp, cmid, 1, 1), bn3=bn_p(ks[5], cexp))
    if stride != 1 or cin != cexp:
        p["ws"] = conv_w(ks[6], cexp, cin, 1, 1)
        p["bns"] = bn_p(ks[7], cexp)
    return p


if __name__ == "__main__":
    key = jax.random.PRNGKey(0)
    kx, kp = jax.random.split(key)

    N, CIN, H, W = 2, 64, 8, 8
    CMID, STRIDE = 32, 2                 # expansion=4 -> 128 output channels

    x = jax.random.normal(kx, (N, CIN, H, W), jnp.float32)
    params = init_params(kp, CIN, CMID, STRIDE)

    fwd = jax.jit(lambda xx, pp: bottleneck_pallas(xx, pp, STRIDE))
    out = fwd(x, params)
    jax.block_until_ready(out)

    ref = bottleneck_ref(x, params, STRIDE)
    assert out.shape == ref.shape == (N, CMID * 4, H // STRIDE, W // STRIDE)
    # bf16 MXU operands (f32 accumulation) -> loosened tolerance vs f32 ref.
    assert bool(jnp.allclose(out, ref, atol=1e-1, rtol=1e-1))

    print("KERNEL_OK")
</pallas_src>

<mosaic_0001>
module attributes {stable_mosaic.version = 11 : i64} {
  func.func @kernel(%arg0: i32, %arg1: memref<1x64x64xbf16, #tpu.memory_space<vmem>>, %arg2: memref<3x16x1xf32, #tpu.memory_space<vmem>>, %arg3: memref<64x32xbf16, #tpu.memory_space<vmem>>, %arg4: memref<1x32xf32, #tpu.memory_space<vmem>>, %arg5: memref<1x32xf32, #tpu.memory_space<vmem>>, %arg6: memref<9x32x32xbf16, #tpu.memory_space<vmem>>, %arg7: memref<1x32xf32, #tpu.memory_space<vmem>>, %arg8: memref<1x32xf32, #tpu.memory_space<vmem>>, %arg9: memref<32x128xbf16, #tpu.memory_space<vmem>>, %arg10: memref<1x128xf32, #tpu.memory_space<vmem>>, %arg11: memref<1x128xf32, #tpu.memory_space<vmem>>, %arg12: memref<64x128xbf16, #tpu.memory_space<vmem>>, %arg13: memref<1x128xf32, #tpu.memory_space<vmem>>, %arg14: memref<1x128xf32, #tpu.memory_space<vmem>>, %arg15: memref<1x16x128xf32, #tpu.memory_space<vmem>>, %arg16: memref<4x40x32xbf16, #tpu.memory_space<vmem>>, %arg17: memref<16x32xf32, #tpu.memory_space<vmem>>) attributes {dimension_semantics = [#tpu.dimension_semantics<parallel>], iteration_bounds = array<i64: 2>, scalar_prefetch = 0 : i64, scratch_operands = 2 : i64, tpu.core_type = #tpu.core_type<tc>, window_params = [{transform_indices = @transform_0, window_bounds = array<i64: 1, 64, 64>}, {pipeline_mode = #tpu.pipeline_mode<synchronous>, transform_indices = @transform_1, window_bounds = array<i64: 3, 16, 1>}, {pipeline_mode = #tpu.pipeline_mode<synchronous>, transform_indices = @transform_2, window_bounds = array<i64: 64, 32>}, {pipeline_mode = #tpu.pipeline_mode<synchronous>, transform_indices = @transform_3, window_bounds = array<i64: 1, 32>}, {pipeline_mode = #tpu.pipeline_mode<synchronous>, transform_indices = @transform_4, window_bounds = array<i64: 1, 32>}, {pipeline_mode = #tpu.pipeline_mode<synchronous>, transform_indices = @transform_5, window_bounds = array<i64: 9, 32, 32>}, {pipeline_mode = #tpu.pipeline_mode<synchronous>, transform_indices = @transform_6, window_bounds = array<i64: 1, 32>}, {pipeline_mode = #tpu.pipeline_mode<synchronous>, transform_indices = @transform_7, window_bounds = array<i64: 1, 32>}, {pipeline_mode = #tpu.pipeline_mode<synchronous>, transform_indices = @transform_8, window_bounds = array<i64: 32, 128>}, {pipeline_mode = #tpu.pipeline_mode<synchronous>, transform_indices = @transform_9, window_bounds = array<i64: 1, 128>}, {pipeline_mode = #tpu.pipeline_mode<synchronous>, transform_indices = @transform_10, window_bounds = array<i64: 1, 128>}, {pipeline_mode = #tpu.pipeline_mode<synchronous>, transform_indices = @transform_11, window_bounds = array<i64: 64, 128>}, {pipeline_mode = #tpu.pipeline_mode<synchronous>, transform_indices = @transform_12, window_bounds = array<i64: 1, 128>}, {pipeline_mode = #tpu.pipeline_mode<synchronous>, transform_indices = @transform_13, window_bounds = array<i64: 1, 128>}, {transform_indices = @transform_14, window_bounds = array<i64: 1, 16, 128>}]} {
    %cst = arith.constant 0.000000e+00 : bf16
    %0 = vector.broadcast %cst : bf16 to vector<4x40x32xbf16>
    %c0 = arith.constant 0 : index
    %c0_0 = arith.constant 0 : index
    %c0_1 = arith.constant 0 : index
    %1 = vector.load %arg16[%c0, %c0_0, %c0_1] : memref<4x40x32xbf16, #tpu.memory_space<vmem>>, vector<4x40x32xbf16>
    tpu.vector_store %arg16[%c0, %c0_0, %c0_1], %0 {strides = array<i32>} : memref<4x40x32xbf16, #tpu.memory_space<vmem>>, vector<4x40x32xbf16>,
    %c0_2 = arith.constant 0 : index
    %c0_3 = arith.constant 0 : index
    %c0_4 = arith.constant 0 : index
    %2 = vector.load %arg1[%c0_2, %c0_3, %c0_4] : memref<1x64x64xbf16, #tpu.memory_space<vmem>>, vector<1x16x64xbf16>
    %3 = vector.shape_cast %2 : vector<1x16x64xbf16> to vector<16x64xbf16>
    %c0_5 = arith.constant 0 : index
    %c0_6 = arith.constant 0 : index
    %4 = vector.load %arg3[%c0_5, %c0_6] : memref<64x32xbf16, #tpu.memory_space<vmem>>, vector<64x32xbf16>
    %cst_7 = arith.constant dense<0.000000e+00> : vector<16x32xf32>
    %5 = tpu.matmul %3, %4, %cst_7 {dimension_numbers = #tpu.dot_dimension_numbers<[1], [0], [0], [1], [0, 0, 1, 1], [], []>} : vector<16x64xbf16>, vector<64x32xbf16>, vector<16x32xf32> -> vector<16x32xf32>
    %c0_8 = arith.constant 0 : index
    %c0_9 = arith.constant 0 : index
    %6 = vector.load %arg4[%c0_8, %c0_9] : memref<1x32xf32, #tpu.memory_space<vmem>>, vector<1x32xf32>
    %7 = vector.broadcast %6 : vector<1x32xf32> to vector<16x32xf32>
    %8 = arith.mulf %5, %7 : vector<16x32xf32>
    %c0_10 = arith.constant 0 : index
    %c0_11 = arith.constant 0 : index
    %9 = vector.load %arg5[%c0_10, %c0_11] : memref<1x32xf32, #tpu.memory_space<vmem>>, vector<1x32xf32>
    %10 = vector.broadcast %9 : vector<1x32xf32> to vector<16x32xf32>
    %11 = arith.addf %8, %10 : vector<16x32xf32>
    %cst_12 = arith.constant 0.000000e+00 : f32
    %12 = vector.broadcast %cst_12 : f32 to vector<16x32xf32>
    %13 = arith.maximumf %11, %12 : vector<16x32xf32>
    %14 = arith.truncf %13 : vector<16x32xf32> to vector<16x32xbf16>
    %c0_13 = arith.constant 0 : index
    %c12 = arith.constant 12 : index
    %c0_14 = arith.constant 0 : index
    %15 = vector.load %arg16[%c0_13, %c12, %c0_14] : memref<4x40x32xbf16, #tpu.memory_space<vmem>>, vector<1x16x32xbf16>
    %16 = vector.shape_cast %15 : vector<1x16x32xbf16> to vector<16x32xbf16>
    %17 = vector.shape_cast %14 : vector<16x32xbf16> to vector<1x16x32xbf16>
    tpu.vector_store %arg16[%c0_13, %c12, %c0_14], %17 {strides = array<i32>} : memref<4x40x32xbf16, #tpu.memory_space<vmem>>, vector<1x16x32xbf16>,
    %c0_15 = arith.constant 0 : index
    %c16 = arith.constant 16 : index
    %c0_16 = arith.constant 0 : index
    %18 = vector.load %arg1[%c0_15, %c16, %c0_16] : memref<1x64x64xbf16, #tpu.memory_space<vmem>>, vector<1x16x64xbf16>
    %19 = vector.shape_cast %18 : vector<1x16x64xbf16> to vector<16x64xbf16>
    %c0_17 = arith.constant 0 : index
    %c0_18 = arith.constant 0 : index
    %20 = vector.load %arg3[%c0_17, %c0_18] : memref<64x32xbf16, #tpu.memory_space<vmem>>, vector<64x32xbf16>
    %cst_19 = arith.constant dense<0.000000e+00> : vector<16x32xf32>
    %21 = tpu.matmul %19, %20, %cst_19 {dimension_numbers = #tpu.dot_dimension_numbers<[1], [0], [0], [1], [0, 0, 1, 1], [], []>} : vector<16x64xbf16>, vector<64x32xbf16>, vector<16x32xf32> -> vector<16x32xf32>
    %c0_20 = arith.constant 0 : index
    %c0_21 = arith.constant 0 : index
    %22 = vector.load %arg4[%c0_20, %c0_21] : memref<1x32xf32, #tpu.memory_space<vmem>>, vector<1x32xf32>
    %23 = vector.broadcast %22 : vector<1x32xf32> to vector<16x32xf32>
    %24 = arith.mulf %21, %23 : vector<16x32xf32>
    %c0_22 = arith.constant 0 : index
    %c0_23 = arith.constant 0 : index
    %25 = vector.load %arg5[%c0_22, %c0_23] : memref<1x32xf32, #tpu.memory_space<vmem>>, vector<1x32xf32>
    %26 = vector.broadcast %25 : vector<1x32xf32> to vector<16x32xf32>
    %27 = arith.addf %24, %26 : vector<16x32xf32>
    %cst_24 = arith.constant 0.000000e+00 : f32
    %28 = vector.broadcast %cst_24 : f32 to vector<16x32xf32>
    %29 = arith.maximumf %27, %28 : vector<16x32xf32>
    %30 = arith.truncf %29 : vector<16x32xf32> to vector<16x32xbf16>
    %c1 = arith.constant 1 : index
    %c12_25 = arith.constant 12 : index
    %c0_26 = arith.constant 0 : index
    %31 = vector.load %arg16[%c1, %c12_25, %c0_26] : memref<4x40x32xbf16, #tpu.memory_space<vmem>>, vector<1x16x32xbf16>
    %32 = vector.shape_cast %31 : vector<1x16x32xbf16> to vector<16x32xbf16>
    %33 = vector.shape_cast %30 : vector<16x32xbf16> to vector<1x16x32xbf16>
    tpu.vector_store %arg16[%c1, %c12_25, %c0_26], %33 {strides = array<i32>} : memref<4x40x32xbf16, #tpu.memory_space<vmem>>, vector<1x16x32xbf16>,
    %c0_27 = arith.constant 0 : index
    %c32 = arith.constant 32 : index
    %c0_28 = arith.constant 0 : index
    %34 = vector.load %arg1[%c0_27, %c32, %c0_28] : memref<1x64x64xbf16, #tpu.memory_space<vmem>>, vector<1x16x64xbf16>
    %35 = vector.shape_cast %34 : vector<1x16x64xbf16> to vector<16x64xbf16>
    %c0_29 = arith.constant 0 : index
    %c0_30 = arith.constant 0 : index
    %36 = vector.load %arg3[%c0_29, %c0_30] : memref<64x32xbf16, #tpu.memory_space<vmem>>, vector<64x32xbf16>
    %cst_31 = arith.constant dense<0.000000e+00> : vector<16x32xf32>
    %37 = tpu.matmul %35, %36, %cst_31 {dimension_numbers = #tpu.dot_dimension_numbers<[1], [0], [0], [1], [0, 0, 1, 1], [], []>} : vector<16x64xbf16>, vector<64x32xbf16>, vector<16x32xf32> -> vector<16x32xf32>
    %c0_32 = arith.constant 0 : index
    %c0_33 = arith.constant 0 : index
    %38 = vector.load %arg4[%c0_32, %c0_33] : memref<1x32xf32, #tpu.memory_space<vmem>>, vector<1x32xf32>
    %39 = vector.broadcast %38 : vector<1x32xf32> to vector<16x32xf32>
    %40 = arith.mulf %37, %39 : vector<16x32xf32>
    %c0_34 = arith.constant 0 : index
    %c0_35 = arith.constant 0 : index
    %41 = vector.load %arg5[%c0_34, %c0_35] : memref<1x32xf32, #tpu.memory_space<vmem>>, vector<1x32xf32>
    %42 = vector.broadcast %41 : vector<1x32xf32> to vector<16x32xf32>
    %43 = arith.addf %40, %42 : vector<16x32xf32>
    %cst_36 = arith.constant 0.000000e+00 : f32
    %44 = vector.broadcast %cst_36 : f32 to vector<16x32xf32>
    %45 = arith.maximumf %43, %44 : vector<16x32xf32>
    %46 = arith.truncf %45 : vector<16x32xf32> to vector<16x32xbf16>
    %c2 = arith.constant 2 : index
    %c12_37 = arith.constant 12 : index
    %c0_38 = arith.constant 0 : index
    %47 = vector.load %arg16[%c2, %c12_37, %c0_38] : memref<4x40x32xbf16, #tpu.memory_space<vmem>>, vector<1x16x32xbf16>
    %48 = vector.shape_cast %47 : vector<1x16x32xbf16> to vector<16x32xbf16>
    %49 = vector.shape_cast %46 : vector<16x32xbf16> to vector<1x16x32xbf16>
    tpu.vector_store %arg16[%c2, %c12_37, %c0_38], %49 {strides = array<i32>} : memref<4x40x32xbf16, #tpu.memory_space<vmem>>, vector<1x16x32xbf16>,
    %c0_39 = arith.constant 0 : index
    %c48 = arith.constant 48 : index
    %c0_40 = arith.constant 0 : index
    %50 = vector.load %arg1[%c0_39, %c48, %c0_40] : memref<1x64x64xbf16, #tpu.memory_space<vmem>>, vector<1x16x64xbf16>
    %51 = vector.shape_cast %50 : vector<1x16x64xbf16> to vector<16x64xbf16>
    %c0_41 = arith.constant 0 : index
    %c0_42 = arith.constant 0 : index
    %52 = vector.load %arg3[%c0_41, %c0_42] : memref<64x32xbf16, #tpu.memory_space<vmem>>, vector<64x32xbf16>
    %cst_43 = arith.constant dense<0.000000e+00> : vector<16x32xf32>
    %53 = tpu.matmul %51, %52, %cst_43 {dimension_numbers = #tpu.dot_dimension_numbers<[1], [0], [0], [1], [0, 0, 1, 1], [], []>} : vector<16x64xbf16>, vector<64x32xbf16>, vector<16x32xf32> -> vector<16x32xf32>
    %c0_44 = arith.constant 0 : index
    %c0_45 = arith.constant 0 : index
    %54 = vector.load %arg4[%c0_44, %c0_45] : memref<1x32xf32, #tpu.memory_space<vmem>>, vector<1x32xf32>
    %55 = vector.broadcast %54 : vector<1x32xf32> to vector<16x32xf32>
    %56 = arith.mulf %53, %55 : vector<16x32xf32>
    %c0_46 = arith.constant 0 : index
    %c0_47 = arith.constant 0 : index
    %57 = vector.load %arg5[%c0_46, %c0_47] : memref<1x32xf32, #tpu.memory_space<vmem>>, vector<1x32xf32>
    %58 = vector.broadcast %57 : vector<1x32xf32> to vector<16x32xf32>
    %59 = arith.addf %56, %58 : vector<16x32xf32>
    %cst_48 = arith.constant 0.000000e+00 : f32
    %60 = vector.broadcast %cst_48 : f32 to vector<16x32xf32>
    %61 = arith.maximumf %59, %60 : vector<16x32xf32>
    %62 = arith.truncf %61 : vector<16x32xf32> to vector<16x32xbf16>
    %c3 = arith.constant 3 : index
    %c12_49 = arith.constant 12 : index
    %c0_50 = arith.constant 0 : index
    %63 = vector.load %arg16[%c3, %c12_49, %c0_50] : memref<4x40x32xbf16, #tpu.memory_space<vmem>>, vector<1x16x32xbf16>
    %64 = vector.shape_cast %63 : vector<1x16x32xbf16> to vector<16x32xbf16>
    %65 = vector.shape_cast %62 : vector<16x32xbf16> to vector<1x16x32xbf16>
    tpu.vector_store %arg16[%c3, %c12_49, %c0_50], %65 {strides = array<i32>} : memref<4x40x32xbf16, #tpu.memory_space<vmem>>, vector<1x16x32xbf16>,
    %cst_51 = arith.constant 0.000000e+00 : f32
    %66 = vector.broadcast %cst_51 : f32 to vector<16x32xf32>
    %c0_52 = arith.constant 0 : index
    %c0_53 = arith.constant 0 : index
    %67 = vector.load %arg17[%c0_52, %c0_53] : memref<16x32xf32, #tpu.memory_space<vmem>>, vector<16x32xf32>
    tpu.vector_store %arg17[%c0_52, %c0_53], %66 {strides = array<i32>} : memref<16x32xf32, #tpu.memory_space<vmem>>, vector<16x32xf32>,
    %c3_54 = arith.constant 3 : index
    %c7 = arith.constant 7 : index
    %c0_55 = arith.constant 0 : index
    %68 = vector.load %arg16[%c3_54, %c7, %c0_55] : memref<4x40x32xbf16, #tpu.memory_space<vmem>>, vector<1x16x32xbf16>
    %69 = vector.shape_cast %68 : vector<1x16x32xbf16> to vector<16x32xbf16>
    %c0_56 = arith.constant 0 : index
    %c0_57 = arith.constant 0 : index
    %c0_58 = arith.constant 0 : index
    %70 = vector.load %arg6[%c0_56, %c0_57, %c0_58] : memref<9x32x32xbf16, #tpu.memory_space<vmem>>, vector<1x32x32xbf16>
    %71 = vector.shape_cast %70 : vector<1x32x32xbf16> to vector<32x32xbf16>
    %cst_59 = arith.constant dense<0.000000e+00> : vector<16x32xf32>
    %72 = tpu.matmul %69, %71, %cst_59 {dimension_numbers = #tpu.dot_dimension_numbers<[1], [0], [0], [1], [0, 0, 1, 1], [], []>} : vector<16x32xbf16>, vector<32x32xbf16>, vector<16x32xf32> -> vector<16x32xf32>
    %c0_60 = arith.constant 0 : index
    %c0_61 = arith.constant 0 : index
    %c0_62 = arith.constant 0 : index
    %73 = vector.load %arg2[%c0_60, %c0_61, %c0_62] : memref<3x16x1xf32, #tpu.memory_space<vmem>>, vector<1x16x1xf32>
    %74 = vector.shape_cast %73 : vector<1x16x1xf32> to vector<16x1xf32>
    %75 = vector.broadcast %74 : vector<16x1xf32> to vector<16x32xf32>
    %76 = arith.mulf %72, %75 : vector<16x32xf32>
    %c0_63 = arith.constant 0 : index
    %c0_64 = arith.constant 0 : index
    %77 = vector.load %arg17[%c0_63, %c0_64] : memref<16x32xf32, #tpu.memory_space<vmem>>, vector<16x32xf32>
    %78 = arith.addf %77, %76 : vector<16x32xf32>
    %c0_65 = arith.constant 0 : index
    %c0_66 = arith.constant 0 : index
    %79 = vector.load %arg17[%c0_65, %c0_66] : memref<16x32xf32, #tpu.memory_space<vmem>>, vector<16x32xf32>
    tpu.vector_store %arg17[%c0_65, %c0_66], %78 {strides = array<i32>} : memref<16x32xf32, #tpu.memory_space<vmem>>, vector<16x32xf32>,
    %c2_67 = arith.constant 2 : index
    %c8 = arith.constant 8 : index
    %c0_68 = arith.constant 0 : index
    %80 = vector.load %arg16[%c2_67, %c8, %c0_68] : memref<4x40x32xbf16, #tpu.memory_space<vmem>>, vector<1x16x32xbf16>
    %81 = vector.shape_cast %80 : vector<1x16x32xbf16> to vector<16x32xbf16>
    %c1_69 = arith.constant 1 : index
    %c0_70 = arith.constant 0 : index
    %c0_71 = arith.constant 0 : index
    %82 = vector.load %arg6[%c1_69, %c0_70, %c0_71] : memref<9x32x32xbf16, #tpu.memory_space<vmem>>, vector<1x32x32xbf16>
    %83 = vector.shape_cast %82 : vector<1x32x32xbf16> to vector<32x32xbf16>
    %cst_72 = arith.constant dense<0.000000e+00> : vector<16x32xf32>
    %84 = tpu.matmul %81, %83, %cst_72 {dimension_numbers = #tpu.dot_dimension_numbers<[1], [0], [0], [1], [0, 0, 1, 1], [], []>} : vector<16x32xbf16>, vector<32x32xbf16>, vector<16x32xf32> -> vector<16x32xf32>
    %c0_73 = arith.constant 0 : index
    %c0_74 = arith.constant 0 : index
    %85 = vector.load %arg17[%c0_73, %c0_74] : memref<16x32xf32, #tpu.memory_space<vmem>>, vector<16x32xf32>
    %86 = arith.addf %85, %84 : vector<16x32xf32>
    %c0_75 = arith.constant 0 : index
    %c0_76 = arith.constant 0 : index
    %87 = vector.load %arg17[%c0_75, %c0_76] : memref<16x32xf32, #tpu.memory_space<vmem>>, vector<16x32xf32>
    tpu.vector_store %arg17[%c0_75, %c0_76], %86 {strides = array<i32>} : memref<16x32xf32, #tpu.memory_space<vmem>>, vector<16x32xf32>,
    %c3_77 = arith.constant 3 : index
    %c8_78 = arith.constant 8 : index
    %c0_79 = arith.constant 0 : index
    %88 = vector.load %arg16[%c3_77, %c8_78, %c0_79] : memref<4x40x32xbf16, #tpu.memory_space<vmem>>, vector<1x16x32xbf16>
    %89 = vector.shape_cast %88 : vector<1x16x32xbf16> to vector<16x32xbf16>
    %c2_80 = arith.constant 2 : index
    %c0_81 = arith.constant 0 : index
    %c0_82 = arith.constant 0 : index
    %90 = vector.load %arg6[%c2_80, %c0_81, %c0_82] : memref<9x32x32xbf16, #tpu.memory_space<vmem>>, vector<1x32x32xbf16>
    %91 = vector.shape_cast %90 : vector<1x32x32xbf16> to vector<32x32xbf16>
    %cst_83 = arith.constant dense<0.000000e+00> : vector<16x32xf32>
    %92 = tpu.matmul %89, %91, %cst_83 {dimension_numbers = #tpu.dot_dimension_numbers<[1], [0], [0], [1], [0, 0, 1, 1], [], []>} : vector<16x32xbf16>, vector<32x32xbf16>, vector<16x32xf32> -> vector<16x32xf32>
    %c0_84 = arith.constant 0 : index
    %c0_85 = arith.constant 0 : index
    %93 = vector.load %arg17[%c0_84, %c0_85] : memref<16x32xf32, #tpu.memory_space<vmem>>, vector<16x32xf32>
    %94 = arith.addf %93, %92 : vector<16x32xf32>
    %c0_86 = arith.constant 0 : index
    %c0_87 = arith.constant 0 : index
    %95 = vector.load %arg17[%c0_86, %c0_87] : memref<16x32xf32, #tpu.memory_space<vmem>>, vector<16x32xf32>
    tpu.vector_store %arg17[%c0_86, %c0_87], %94 {strides = array<i32>} : memref<16x32xf32, #tpu.memory_space<vmem>>, vector<16x32xf32>,
    %c1_88 = arith.constant 1 : index
    %c11 = arith.constant 11 : index
    %c0_89 = arith.constant 0 : index
    %96 = vector.load %arg16[%c1_88, %c11, %c0_89] : memref<4x40x32xbf16, #tpu.memory_space<vmem>>, vector<1x16x32xbf16>
    %97 = vector.shape_cast %96 : vector<1x16x32xbf16> to vector<16x32xbf16>
    %c3_90 = arith.constant 3 : index
    %c0_91 = arith.constant 0 : index
    %c0_92 = arith.constant 0 : index
    %98 = vector.load %arg6[%c3_90, %c0_91, %c0_92] : memref<9x32x32xbf16, #tpu.memory_space<vmem>>, vector<1x32x32xbf16>
    %99 = vector.shape_cast %98 : vector<1x32x32xbf16> to vector<32x32xbf16>
    %cst_93 = arith.constant dense<0.000000e+00> : vector<16x32xf32>
    %100 = tpu.matmul %97, %99, %cst_93 {dimension_numbers = #tpu.dot_dimension_numbers<[1], [0], [0], [1], [0, 0, 1, 1], [], []>} : vector<16x32xbf16>, vector<32x32xbf16>, vector<16x32xf32> -> vector<16x32xf32>
    %c0_94 = arith.constant 0 : index
    %c0_95 = arith.constant 0 : index
    %c0_96 = arith.constant 0 : index
    %101 = vector.load %arg2[%c0_94, %c0_95, %c0_96] : memref<3x16x1xf32, #tpu.memory_space<vmem>>, vector<1x16x1xf32>
    %102 = vector.shape_cast %101 : vector<1x16x1xf32> to vector<16x1xf32>
    %103 = vector.broadcast %102 : vector<16x1xf32> to vector<16x32xf32>
    %104 = arith.mulf %100, %103 : vector<16x32xf32>
    %c0_97 = arith.constant 0 : index
    %c0_98 = arith.constant 0 : index
    %105 = vector.load %arg17[%c0_97, %c0_98] : memref<16x32xf32, #tpu.memory_space<vmem>>, vector<16x32xf32>
    %106 = arith.addf %105, %104 : vector<16x32xf32>
    %c0_99 = arith.constant 0 : index
    %c0_100 = arith.constant 0 : index
    %107 = vector.load %arg17[%c0_99, %c0_100] : memref<16x32xf32, #tpu.memory_space<vmem>>, vector<16x32xf32>
    tpu.vector_store %arg17[%c0_99, %c0_100], %106 {strides = array<i32>} : memref<16x32xf32, #tpu.memory_space<vmem>>, vector<16x32xf32>,
    %c0_101 = arith.constant 0 : index
    %c12_102 = arith.constant 12 : index
    %c0_103 = arith.constant 0 : index
    %108 = vector.load %arg16[%c0_101, %c12_102, %c0_103] : memref<4x40x32xbf16, #tpu.memory_space<vmem>>, vector<1x16x32xbf16>
    %109 = vector.shape_cast %108 : vector<1x16x32xbf16> to vector<16x32xbf16>
    %c4 = arith.constant 4 : index
    %c0_104 = arith.constant 0 : index
    %c0_105 = arith.constant 0 : index
    %110 = vector.load %arg6[%c4, %c0_104, %c0_105] : memref<9x32x32xbf16, #tpu.memory_space<vmem>>, vector<1x32x32xbf16>
    %111 = vector.shape_cast %110 : vector<1x32x32xbf16> to vector<32x32xbf16>
    %cst_106 = arith.constant dense<0.000000e+00> : vector<16x32xf32>
    %112 = tpu.matmul %109, %111, %cst_106 {dimension_numbers = #tpu.dot_dimension_numbers<[1], [0], [0], [1], [0, 0, 1, 1], [], []>} : vector<16x32xbf16>, vector<32x32xbf16>, vector<16x32xf32> -> vector<16x32xf32>
    %c0_107 = arith.constant 0 : index
    %c0_108 = arith.constant 0 : index
    %113 = vector.load %arg17[%c0_107, %c0_108] : memref<16x32xf32, #tpu.memory_space<vmem>>, vector<16x32xf32>
    %114 = arith.addf %113, %112 : vector<16x32xf32>
    %c0_109 = arith.constant 0 : index
    %c0_110 = arith.constant 0 : index
    %115 = vector.load %arg17[%c0_109, %c0_110] : memref<16x32xf32, #tpu.memory_space<vmem>>, vector<16x32xf32>
    tpu.vector_store %arg17[%c0_109, %c0_110], %114 {strides = array<i32>} : memref<16x32xf32, #tpu.memory_space<vmem>>, vector<16x32xf32>,
    %c1_111 = arith.constant 1 : index
    %c12_112 = arith.constant 12 : index
    %c0_113 = arith.constant 0 : index
    %116 = vector.load %arg16[%c1_111, %c12_112, %c0_113] : memref<4x40x32xbf16, #tpu.memory_space<vmem>>, vector<1x16x32xbf16>
    %117 = vector.shape_cast %116 : vector<1x16x32xbf16> to vector<16x32xbf16>
    %c5 = arith.constant 5 : index
    %c0_114 = arith.constant 0 : index
    %c0_115 = arith.constant 0 : index
    %118 = vector.load %arg6[%c5, %c0_114, %c0_115] : memref<9x32x32xbf16, #tpu.memory_space<vmem>>, vector<1x32x32xbf16>
    %119 = vector.shape_cast %118 : vector<1x32x32xbf16> to vector<32x32xbf16>
    %cst_116 = arith.constant dense<0.000000e+00> : vector<16x32xf32>
    %120 = tpu.matmul %117, %119, %cst_116 {dimension_numbers = #tpu.dot_dimension_numbers<[1], [0], [0], [1], [0, 0, 1, 1], [], []>} : vector<16x32xbf16>, vector<32x32xbf16>, vector<16x32xf32> -> vector<16x32xf32>
    %c0_117 = arith.constant 0 : index
    %c0_118 = arith.constant 0 : index
    %121 = vector.load %arg17[%c0_117, %c0_118] : memref<16x32xf32, #tpu.memory_space<vmem>>, vector<16x32xf32>
    %122 = arith.addf %121, %120 : vector<16x32xf32>
    %c0_119 = arith.constant 0 : index
    %c0_120 = arith.constant 0 : index
    %123 = vector.load %arg17[%c0_119, %c0_120] : memref<16x32xf32, #tpu.memory_space<vmem>>, vector<16x32xf32>
    tpu.vector_store %arg17[%c0_119, %c0_120], %122 {strides = array<i32>} : memref<16x32xf32, #tpu.memory_space<vmem>>, vector<16x32xf32>,
    %c3_121 = arith.constant 3 : index
    %c11_122 = arith.constant 11 : index
    %c0_123 = arith.constant 0 : index
    %124 = vector.load %arg16[%c3_121, %c11_122, %c0_123] : memref<4x40x32xbf16, #tpu.memory_space<vmem>>, vector<1x16x32xbf16>
    %125 = vector.shape_cast %124 : vector<1x16x32xbf16> to vector<16x32xbf16>
    %c6 = arith.constant 6 : index
    %c0_124 = arith.constant 0 : index
    %c0_125 = arith.constant 0 : index
    %126 = vector.load %arg6[%c6, %c0_124, %c0_125] : memref<9x32x32xbf16, #tpu.memory_space<vmem>>, vector<1x32x32xbf16>
    %127 = vector.shape_cast %126 : vector<1x32x32xbf16> to vector<32x32xbf16>
    %cst_126 = arith.constant dense<0.000000e+00> : vector<16x32xf32>
    %128 = tpu.matmul %125, %127, %cst_126 {dimension_numbers = #tpu.dot_dimension_numbers<[1], [0], [0], [1], [0, 0, 1, 1], [], []>} : vector<16x32xbf16>, vector<32x32xbf16>, vector<16x32xf32> -> vector<16x32xf32>
    %c0_127 = arith.constant 0 : index
    %c0_128 = arith.constant 0 : index
    %c0_129 = arith.constant 0 : index
    %129 = vector.load %arg2[%c0_127, %c0_128, %c0_129] : memref<3x16x1xf32, #tpu.memory_space<vmem>>, vector<1x16x1xf32>
    %130 = vector.shape_cast %129 : vector<1x16x1xf32> to vector<16x1xf32>
    %131 = vector.broadcast %130 : vector<16x1xf32> to vector<16x32xf32>
    %132 = arith.mulf %128, %131 : vector<16x32xf32>
    %c0_130 = arith.constant 0 : index
    %c0_131 = arith.constant 0 : index
    %133 = vector.load %arg17[%c0_130, %c0_131] : memref<16x32xf32, #tpu.memory_space<vmem>>, vector<16x32xf32>
    %134 = arith.addf %133, %132 : vector<16x32xf32>
    %c0_132 = arith.constant 0 : index
    %c0_133 = arith.constant 0 : index
    %135 = vector.load %arg17[%c0_132, %c0_133] : memref<16x32xf32, #tpu.memory_space<vmem>>, vector<16x32xf32>
    tpu.vector_store %arg17[%c0_132, %c0_133], %134 {strides = array<i32>} : memref<16x32xf32, #tpu.memory_space<vmem>>, vector<16x32xf32>,
    %c2_134 = arith.constant 2 : index
    %c12_135 = arith.constant 12 : index
    %c0_136 = arith.constant 0 : index
    %136 = vector.load %arg16[%c2_134, %c12_135, %c0_136] : memref<4x40x32xbf16, #tpu.memory_space<vmem>>, vector<1x16x32xbf16>
    %137 = vector.shape_cast %136 : vector<1x16x32xbf16> to vector<16x32xbf16>
    %c7_137 = arith.constant 7 : index
    %c0_138 = arith.constant 0 : index
    %c0_139 = arith.constant 0 : index
    %138 = vector.load %arg6[%c7_137, %c0_138, %c0_139] : memref<9x32x32xbf16, #tpu.memory_space<vmem>>, vector<1x32x32xbf16>
    %139 = vector.shape_cast %138 : vector<1x32x32xbf16> to vector<32x32xbf16>
    %cst_140 = arith.constant dense<0.000000e+00> : vector<16x32xf32>
    %140 = tpu.matmul %137, %139, %cst_140 {dimension_numbers = #tpu.dot_dimension_numbers<[1], [0], [0], [1], [0, 0, 1, 1], [], []>} : vector<16x32xbf16>, vector<32x32xbf16>, vector<16x32xf32> -> vector<16x32xf32>
    %c0_141 = arith.constant 0 : index
    %c0_142 = arith.constant 0 : index
    %141 = vector.load %arg17[%c0_141, %c0_142] : memref<16x32xf32, #tpu.memory_space<vmem>>, vector<16x32xf32>
    %142 = arith.addf %141, %140 : vector<16x32xf32>
    %c0_143 = arith.constant 0 : index
    %c0_144 = arith.constant 0 : index
    %143 = vector.load %arg17[%c0_143, %c0_144] : memref<16x32xf32, #tpu.memory_space<vmem>>, vector<16x32xf32>
    tpu.vector_store %arg17[%c0_143, %c0_144], %142 {strides = array<i32>} : memref<16x32xf32, #tpu.memory_space<vmem>>, vector<16x32xf32>,
    %c3_145 = arith.constant 3 : index
    %c12_146 = arith.constant 12 : index
    %c0_147 = arith.constant 0 : index
    %144 = vector.load %arg16[%c3_145, %c12_146, %c0_147] : memref<4x40x32xbf16, #tpu.memory_space<vmem>>, vector<1x16x32xbf16>
    %145 = vector.shape_cast %144 : vector<1x16x32xbf16> to vector<16x32xbf16>
    %c8_148 = arith.constant 8 : index
    %c0_149 = arith.constant 0 : index
    %c0_150 = arith.constant 0 : index
    %146 = vector.load %arg6[%c8_148, %c0_149, %c0_150] : memref<9x32x32xbf16, #tpu.memory_space<vmem>>, vector<1x32x32xbf16>
    %147 = vector.shape_cast %146 : vector<1x32x32xbf16> to vector<32x32xbf16>
    %cst_151 = arith.constant dense<0.000000e+00> : vector<16x32xf32>
    %148 = tpu.matmul %145, %147, %cst_151 {dimension_numbers = #tpu.dot_dimension_numbers<[1], [0], [0], [1], [0, 0, 1, 1], [], []>} : vector<16x32xbf16>, vector<32x32xbf16>, vector<16x32xf32> -> vector<16x32xf32>
    %c0_152 = arith.constant 0 : index
    %c0_153 = arith.constant 0 : index
    %149 = vector.load %arg17[%c0_152, %c0_153] : memref<16x32xf32, #tpu.memory_space<vmem>>, vector<16x32xf32>
    %150 = arith.addf %149, %148 : vector<16x32xf32>
    %c0_154 = arith.constant 0 : index
    %c0_155 = arith.constant 0 : index
    %151 = vector.load %arg17[%c0_154, %c0_155] : memref<16x32xf32, #tpu.memory_space<vmem>>, vector<16x32xf32>
    tpu.vector_store %arg17[%c0_154, %c0_155], %150 {strides = array<i32>} : memref<16x32xf32, #tpu.memory_space<vmem>>, vector<16x32xf32>,
    %c0_156 = arith.constant 0 : index
    %c0_157 = arith.constant 0 : index
    %152 = vector.load %arg17[%c0_156, %c0_157] : memref<16x32xf32, #tpu.memory_space<vmem>>, vector<16x32xf32>
    %c0_158 = arith.constant 0 : index
    %c0_159 = arith.constant 0 : index
    %153 = vector.load %arg7[%c0_158, %c0_159] : memref<1x32xf32, #tpu.memory_space<vmem>>, vector<1x32xf32>
    %154 = vector.broadcast %153 : vector<1x32xf32> to vector<16x32xf32>
    %155 = arith.mulf %152, %154 : vector<16x32xf32>
    %c0_160 = arith.constant 0 : index
    %c0_161 = arith.constant 0 : index
    %156 = vector.load %arg8[%c0_160, %c0_161] : memref<1x32xf32, #tpu.memory_space<vmem>>, vector<1x32xf32>
    %157 = vector.broadcast %156 : vector<1x32xf32> to vector<16x32xf32>
    %158 = arith.addf %155, %157 : vector<16x32xf32>
    %cst_162 = arith.constant 0.000000e+00 : f32
    %159 = vector.broadcast %cst_162 : f32 to vector<16x32xf32>
    %160 = arith.maximumf %158, %159 : vector<16x32xf32>
    %161 = arith.truncf %160 : vector<16x32xf32> to vector<16x32xbf16>
    %c0_163 = arith.constant 0 : index
    %c0_164 = arith.constant 0 : index
    %162 = vector.load %arg9[%c0_163, %c0_164] : memref<32x128xbf16, #tpu.memory_space<vmem>>, vector<32x128xbf16>
    %cst_165 = arith.constant dense<0.000000e+00> : vector<16x128xf32>
    %163 = tpu.matmul %161, %162, %cst_165 {dimension_numbers = #tpu.dot_dimension_numbers<[1], [0], [0], [1], [0, 0, 1, 1], [], []>} : vector<16x32xbf16>, vector<32x128xbf16>, vector<16x128xf32> -> vector<16x128xf32>
    %c0_166 = arith.constant 0 : index
    %c0_167 = arith.constant 0 : index
    %164 = vector.load %arg10[%c0_166, %c0_167] : memref<1x128xf32, #tpu.memory_space<vmem>>, vector<1x128xf32>
    %165 = vector.broadcast %164 : vector<1x128xf32> to vector<16x128xf32>
    %166 = arith.mulf %163, %165 : vector<16x128xf32>
    %c0_168 = arith.constant 0 : index
    %c0_169 = arith.constant 0 : index
    %167 = vector.load %arg11[%c0_168, %c0_169] : memref<1x128xf32, #tpu.memory_space<vmem>>, vector<1x128xf32>
    %168 = vector.broadcast %167 : vector<1x128xf32> to vector<16x128xf32>
    %169 = arith.addf %166, %168 : vector<16x128xf32>
    %c0_170 = arith.constant 0 : index
    %c0_171 = arith.constant 0 : index
    %c0_172 = arith.constant 0 : index
    %170 = vector.load %arg1[%c0_170, %c0_171, %c0_172] : memref<1x64x64xbf16, #tpu.memory_space<vmem>>, vector<1x16x64xbf16>
    %171 = vector.shape_cast %170 : vector<1x16x64xbf16> to vector<16x64xbf16>
    %c0_173 = arith.constant 0 : index
    %c0_174 = arith.constant 0 : index
    %172 = vector.load %arg12[%c0_173, %c0_174] : memref<64x128xbf16, #tpu.memory_space<vmem>>, vector<64x128xbf16>
    %cst_175 = arith.constant dense<0.000000e+00> : vector<16x128xf32>
    %173 = tpu.matmul %171, %172, %cst_175 {dimension_numbers = #tpu.dot_dimension_numbers<[1], [0], [0], [1], [0, 0, 1, 1], [], []>} : vector<16x64xbf16>, vector<64x128xbf16>, vector<16x128xf32> -> vector<16x128xf32>
    %c0_176 = arith.constant 0 : index
    %c0_177 = arith.constant 0 : index
    %174 = vector.load %arg13[%c0_176, %c0_177] : memref<1x128xf32, #tpu.memory_space<vmem>>, vector<1x128xf32>
    %175 = vector.broadcast %174 : vector<1x128xf32> to vector<16x128xf32>
    %176 = arith.mulf %173, %175 : vector<16x128xf32>
    %c0_178 = arith.constant 0 : index
    %c0_179 = arith.constant 0 : index
    %177 = vector.load %arg14[%c0_178, %c0_179] : memref<1x128xf32, #tpu.memory_space<vmem>>, vector<1x128xf32>
    %178 = vector.broadcast %177 : vector<1x128xf32> to vector<16x128xf32>
    %179 = arith.addf %176, %178 : vector<16x128xf32>
    %180 = arith.addf %169, %179 : vector<16x128xf32>
    %cst_180 = arith.constant 0.000000e+00 : f32
    %181 = vector.broadcast %cst_180 : f32 to vector<16x128xf32>
    %182 = arith.maximumf %180, %181 : vector<16x128xf32>
    %c0_181 = arith.constant 0 : index
    %c0_182 = arith.constant 0 : index
    %c0_183 = arith.constant 0 : index
    %183 = vector.load %arg15[%c0_181, %c0_182, %c0_183] : memref<1x16x128xf32, #tpu.memory_space<vmem>>, vector<1x16x128xf32>
    %184 = vector.shape_cast %183 : vector<1x16x128xf32> to vector<16x128xf32>
    %185 = vector.shape_cast %182 : vector<16x128xf32> to vector<1x16x128xf32>
    tpu.vector_store %arg15[%c0_181, %c0_182, %c0_183], %185 {strides = array<i32>} : memref<1x16x128xf32, #tpu.memory_space<vmem>>, vector<1x16x128xf32>,
    return
  }
  func.func @transform_0(%arg0: i32) -> (i32, i32, i32) {
    %c0_i32 = arith.constant 0 : i32
    %c0_i32_0 = arith.constant 0 : i32
    %c0_i32_1 = arith.constant 0 : i32
    return %arg0, %c0_i32, %c0_i32_0 : i32, i32, i32
  }
  func.func @transform_1(%arg0: i32) -> (i32, i32, i32) {
    %c0_i32 = arith.constant 0 : i32
    %c0_i32_0 = arith.constant 0 : i32
    %c0_i32_1 = arith.constant 0 : i32
    %c0_i32_2 = arith.constant 0 : i32
    return %c0_i32, %c0_i32_0, %c0_i32_1 : i32, i32, i32
  }
  func.func @transform_2(%arg0: i32) -> (i32, i32) {
    %c0_i32 = arith.constant 0 : i32
    %c0_i32_0 = arith.constant 0 : i32
    %c0_i32_1 = arith.constant 0 : i32
    return %c0_i32, %c0_i32_0 : i32, i32
  }
  func.func @transform_3(%arg0: i32) -> (i32, i32) {
    %c0_i32 = arith.constant 0 : i32
    %c0_i32_0 = arith.constant 0 : i32
    %c0_i32_1 = arith.constant 0 : i32
    return %c0_i32, %c0_i32_0 : i32, i32
  }
  func.func @transform_4(%arg0: i32) -> (i32, i32) {
    %c0_i32 = arith.constant 0 : i32
    %c0_i32_0 = arith.constant 0 : i32
    %c0_i32_1 = arith.constant 0 : i32
    return %c0_i32, %c0_i32_0 : i32, i32
  }
  func.func @transform_5(%arg0: i32) -> (i32, i32, i32) {
    %c0_i32 = arith.constant 0 : i32
    %c0_i32_0 = arith.constant 0 : i32
    %c0_i32_1 = arith.constant 0 : i32
    %c0_i32_2 = arith.constant 0 : i32
    return %c0_i32, %c0_i32_0, %c0_i32_1 : i32, i32, i32
  }
  func.func @transform_6(%arg0: i32) -> (i32, i32) {
    %c0_i32 = arith.constant 0 : i32
    %c0_i32_0 = arith.constant 0 : i32
    %c0_i32_1 = arith.constant 0 : i32
    return %c0_i32, %c0_i32_0 : i32, i32
  }
  func.func @transform_7(%arg0: i32) -> (i32, i32) {
    %c0_i32 = arith.constant 0 : i32
    %c0_i32_0 = arith.constant 0 : i32
    %c0_i32_1 = arith.constant 0 : i32
    return %c0_i32, %c0_i32_0 : i32, i32
  }
  func.func @transform_8(%arg0: i32) -> (i32, i32) {
    %c0_i32 = arith.constant 0 : i32
    %c0_i32_0 = arith.constant 0 : i32
    %c0_i32_1 = arith.constant 0 : i32
    return %c0_i32, %c0_i32_0 : i32, i32
  }
  func.func @transform_9(%arg0: i32) -> (i32, i32) {
    %c0_i32 = arith.constant 0 : i32
    %c0_i32_0 = arith.constant 0 : i32
    %c0_i32_1 = arith.constant 0 : i32
    return %c0_i32, %c0_i32_0 : i32, i32
  }
  func.func @transform_10(%arg0: i32) -> (i32, i32) {
    %c0_i32 = arith.constant 0 : i32
    %c0_i32_0 = arith.constant 0 : i32
    %c0_i32_1 = arith.constant 0 : i32
    return %c0_i32, %c0_i32_0 : i32, i32
  }
  func.func @transform_11(%arg0: i32) -> (i32, i32) {
    %c0_i32 = arith.constant 0 : i32
    %c0_i32_0 = arith.constant 0 : i32
    %c0_i32_1 = arith.constant 0 : i32
    return %c0_i32, %c0_i32_0 : i32, i32
  }
  func.func @transform_12(%arg0: i32) -> (i32, i32) {
    %c0_i32 = arith.constant 0 : i32
    %c0_i32_0 = arith.constant 0 : i32
    %c0_i32_1 = arith.constant 0 : i32
    return %c0_i32, %c0_i32_0 : i32, i32
  }
  func.func @transform_13(%arg0: i32) -> (i32, i32) {
    %c0_i32 = arith.constant 0 : i32
    %c0_i32_0 = arith.constant 0 : i32
    %c0_i32_1 = arith.constant 0 : i32
    return %c0_i32, %c0_i32_0 : i32, i32
  }
  func.func @transform_14(%arg0: i32) -> (i32, i32, i32) {
    %c0_i32 = arith.constant 0 : i32
    %c0_i32_0 = arith.constant 0 : i32
    %c0_i32_1 = arith.constant 0 : i32
    return %arg0, %c0_i32, %c0_i32_0 : i32, i32, i32
  }
}

</mosaic_0001>

<bundles_post_ra>
// kernel: _lambda_.1
= control target key start
LH: loop header
LB: loop body
LE: loop exit
PB: predicated region body
PF: predicated region fallthrough
CT: control target
= control target key end

     0   :  { %s3091_s0 = inlined_call_operand.vmem [shape: bf16[2,64,64], index: 0, kind: input, shape index: {}]   ;;  %s3092_s1 = inlined_call_operand.vmem [shape: f32[3,16,1], index: 1, kind: input, shape index: {}]   ;;  %s3093_s2 = inlined_call_operand.vmem [shape: bf16[64,32], index: 2, kind: input, shape index: {}]   ;;  %s3094_s3 = inlined_call_operand.vmem [shape: f32[1,32], index: 3, kind: input, shape index: {}]   ;;  %s3095_s4 = inlined_call_operand.vmem [shape: f32[1,32], index: 4, kind: input, shape index: {}]   ;;  %s3096_s5 = inlined_call_operand.vmem [shape: bf16[9,32,32], index: 5, kind: input, shape index: {}]   ;;  %s3097_s6 = inlined_call_operand.vmem [shape: f32[1,32], index: 6, kind: input, shape index: {}]   ;;  %s3098_s7 = inlined_call_operand.vmem [shape: f32[1,32], index: 7, kind: input, shape index: {}]   ;;  %s3099_s8 = inlined_call_operand.vmem [shape: bf16[32,128], index: 8, kind: input, shape index: {}]   ;;  %s3100_s9 = inlined_call_operand.vmem [shape: f32[1,128], index: 9, kind: input, shape index: {}]   ;;  %s3101_s10 = inlined_call_operand.vmem [shape: f32[1,128], index: 10, kind: input, shape index: {}]   ;;  %s3102_s11 = inlined_call_operand.vmem [shape: bf16[64,128], index: 11, kind: input, shape index: {}]   ;;  %s3103_s12 = inlined_call_operand.vmem [shape: f32[1,128], index: 12, kind: input, shape index: {}]   ;;  %s3104_s13 = inlined_call_operand.vmem [shape: f32[1,128], index: 13, kind: input, shape index: {}]   ;;  %s3105_s14 = inlined_call_operand.hbm [shape: f32[2,16,128], index: 14, kind: output, shape index: {}]  }
   0x1   :  { %3109 = sst [smem:[#allocation10_spill]] %s3091_s0 }
   0x2   :  { %19 = vsyncpa [#allocation5], 0 }
   0x3   :  { %21 = vsyncpa [#allocation5 + $0x1], 0  ;;  %s2662_s29 = smov 0   ;;  %s2664_s30 = smov 0  }
   0x4   :  { %s2666_s15 = smov 0   ;;  %s2668_s16 = smov 0  }
   0x5 LB: > { %3110 = sst [smem:[#allocation7_spill]] %s2575_s15  ;;  %s2683_s17 = sadd.s32 4294967295, %s2579_s16   ;;  %s2579_s16 = sphi %s2668_s16, %s3118_s16   ;;  %s2575_s15 = sphi %s2666_s15, %s3120_s15   ;;  %s2571_s30 = sphi %s2664_s30, %s3122_s30   ;;  %s2567_s29 = sphi %s2662_s29, %s3121_s29  }
   0x6   : > { %s2065_s18 = sadd.s32 4294967294, %s2579_s16   ;;  %s2687_s19 = sadd.s32 1, %s2579_s16  }
   0x7   : > { %3111 = sst [smem:[#allocation8_spill]] %s2687_s19  ;;  %s333_s20 = sadd.s32 1, %s2575_s15 }
   0x8   : > { %s330_s21 = ssub.s32 %s2579_s16, %s2687_s19  ;;  %p343_p0 = scmp.ne.s32.totalorder %s2575_s15, %s2571_s30 }
   0x9   : > { %p331_p1 = scmp.eq.s32.totalorder %s330_s21, 0  ;;  %p344_p2 = scmp.eq.s32.totalorder %s2683_s17, 1 }
   0xa   : > { %p349_p3 = scmp.ne.s32.totalorder %s2571_s30, %s2567_s29  ;;  %p350_p4 = scmp.eq.s32.totalorder %s2065_s18, 1 }
   0xb   : > { %s2698_s22 = scalar_select %p331_p1, %s2575_s15, %s333_s20  }
   0xc   : > { %p2700_p5 = por %p344_p2, %p343_p0  ;;  %p2704_p6 = por %p350_p4, %p349_p3 }
   0xd   : > { %3112 = sst [smem:[#allocation9_spill]] %s2698_s22  ;;  %p2068_p7 = scmp.ge.s32.totalorder %s2579_s16, 1 }
   0xe   : > { %p415_p8 = scmp.lt.s32.totalorder %s2579_s16, 3 }
  0x10   : > { %p416_p9 = pnand %p2068_p7, %p415_p8 }
  0x11   : > { %p461_p10 = scmp.lt.s32.totalorder (!%p416_p9), %s2683_s17, 1  ;;  %s3115_s0 = sld [smem:[#allocation10_spill]] (!%p416_p9) }
  0x12   : > { %419 = sbr.rel (%p416_p9) target bundleno = 796 (0x31c), region = 76  ;;  %s2216_s22 = sshll.u32 (!%p416_p9), %s2683_s17, 8 }
  0x13   : > { %s3047_s25 = scalar_lea.hbm (!%p416_p9), %s3105_s14, %s2216_s22 }
  0x17   : > { %v2458_v0 = vld [vmem:[%s3093_s2 + $0x18] sm:$0xff]   ;;  %v2581_v1 = vmov 0.0   ;;  %v2459_v2 = vld [vmem:[%s3093_s2 + $0x10] sm:$0xff]   ;;  %vm2582_vm0 = vmmov 0   ;;  %s462_s21 = scalar_select %p461_p10, %s2683_s17, 1  ;;  %v2460_v4 = vld [vmem:[%s3093_s2 + $0x8] sm:$0xff]  }
  0x18   : > { %2284 = vmatprep.subr.bf16.mxu1 %v2581_v1  ;;  %2272 = vmatprep.subr.bf16.mxu0 %v2581_v1  ;;  %v2462_v3 = vld [vmem:[%s3093_s2 + $0x18] sm:$0xff]   ;;  %vm467_vm1 = vcmask 257024   ;;  %v2465_v5 = vld [vmem:[%s3093_s2 + $0x10] sm:$0xff]   ;;  %v2583_v6 = vmov 0   ;;  %v2461_v7 = vld [vmem:[%s3093_s2] sm:$0xff]   ;;  %vm527_vm2 = vcmask 523264  }
  0x19   : > { %2285 = vmatpush3.bf16.msra.mxu1 %v2458_v0  ;;  %2292 = vmatprep.mubr.msk.bf16.mxu1 %vm2582_vm0, %v2581_v1  ;;  %s2207_s27 = sshll.u32 %s462_s21, 5  ;;  %474 = vst.msk [vmem:[#allocation2 + $0x18] sm:$0xf] %vm467_vm1, %v2583_v6  ;;  %469 = vst.msk [vmem:[#allocation2 + $0x4] sm:$0xf] %vm467_vm1, %v2583_v6  ;;  %v2467_v8 = vld [vmem:[%s3093_s2 + $0x8] sm:$0xff]  }
  0x1a   : > { %2286 = vmatprep.subr.bf16.mxu1 %v2581_v1  ;;  %2280 = vmatprep.mubr.msk.bf16.mxu0 %vm2582_vm0, %v2581_v1  ;;  %s2738_s18 = scalar_lea.vmem %s3115_s0, %s2207_s27  ;;  %470 = vst.msk [vmem:[#allocation2 + $0x8] sm:$0xf] %vm467_vm1, %v2583_v6  ;;  %471 = vst.msk [vmem:[#allocation2 + $0xc] sm:$0xf] %vm467_vm1, %v2583_v6  ;;  %v2464_v9 = vld [vmem:[%s3093_s2 + $0x18] sm:$0xff]   ;;  %v2469_v11 = vld [vmem:[%s3093_s2] sm:$0xff]  }
  0x1b   : > { %2273 = vmatpush3.bf16.msra.mxu0 %v2462_v3  ;;  %475 = vst.msk [vmem:[#allocation2 + $0x1c] sm:$0xf] %vm467_vm1, %v2583_v6  ;;  %476 = vst.msk [vmem:[#allocation2 + $0x20] sm:$0xf] %vm467_vm1, %v2583_v6  ;;  %2456 = vset.pattern.permute.xlu0 %v2583_v6  ;;  %v2463_v10 = vld [vmem:[%s2738_s18 + $0x8] sm:$0xff]   ;;  %v2466_v12 = vld [vmem:[%s3093_s2 + $0x10] sm:$0xff]  }
  0x1c   : > { %2274 = vmatprep.subr.bf16.mxu0 %v2581_v1  ;;  %479 = vst.msk [vmem:[#allocation2 + $0x2c] sm:$0xf] %vm467_vm1, %v2583_v6  ;;  %480 = vst.msk [vmem:[#allocation2 + $0x30] sm:$0xf] %vm467_vm1, %v2583_v6  ;;  %2457 = vset.pattern.permute.xlu1 %v2583_v6  ;;  %v2471_v13 = vld [vmem:[%s2738_s18] sm:$0xff]   ;;  %v2472_v14 = vld [vmem:[%s3093_s2 + $0x18] sm:$0xff]  }
  0x1d   : > { %2287 = vmatpush3.bf16.msra.mxu1 %v2459_v2  ;;  %481 = vst.msk [vmem:[#allocation2 + $0x34] sm:$0xf] %vm467_vm1, %v2583_v6  ;;  %483 = vst.msk [vmem:[#allocation2 + $0x3c] sm:$0xf] %vm467_vm1, %v2583_v6  ;;  %v2468_v15 = vld [vmem:[%s3093_s2 + $0x8] sm:$0xff]   ;;  %v2474_v16 = vld [vmem:[%s3093_s2 + $0x10] sm:$0xff]  }
  0x1e   : > { %2288 = vmatprep.subr.bf16.mxu1 %v2581_v1  ;;  %484 = vst.msk [vmem:[#allocation2 + $0x40] sm:$0xf] %vm467_vm1, %v2583_v6  ;;  %485 = vst.msk [vmem:[#allocation2 + $0x44] sm:$0xf] %vm467_vm1, %v2583_v6  ;;  %v2470_v17 = vld [vmem:[%s3093_s2] sm:$0xff]   ;;  %v2475_v18 = vld [vmem:[%s3093_s2 + $0x8] sm:$0xff]  }
  0x1f   : > { %486 = vst.msk [vmem:[#allocation2 + $0x48] sm:$0xf] %vm467_vm1, %v2583_v6  ;;  %2275 = vmatpush3.bf16.msra.mxu0 %v2465_v5  ;;  %v2473_v19 = vld [vmem:[%s2738_s18 + $0x18] sm:$0xff]   ;;  %v2476_v20 = vld [vmem:[%s3093_s2] sm:$0xff]   ;;  %v2477_v21 = vld [vmem:[%s2738_s18 + $0x10] sm:$0xff]   ;;  %vm977_vm3 = vcmask 261120  }
  0x20   : > { %2276 = vmatprep.subr.bf16.mxu0 %v2581_v1  ;;  %v2478_v22 = vld [vmem:[%s3096_s5 + $0x28] sm:$0xff]   ;;  %v2479_v23 = vld [vmem:[%s3096_s5 + $0x20] sm:$0xff]   ;;  %978 = vst.msk [vmem:[#allocation3] sm:$0xff] %vm977_vm3, %v2581_v1  ;;  %979 = vst.msk [vmem:[#allocation3 + $0x8] sm:$0xff] %vm977_vm3, %v2581_v1  ;;  %vm609_vm4 = vcmask 257026   ;;  %vm598_vm5 = vcmask 1041408  }
  0x21   : > { %2289 = vmatpush3.bf16.msra.mxu1 %v2460_v4  ;;  %v2480_v24 = vld [vmem:[%s3096_s5 + $0x8] sm:$0xff]   ;;  %v2483_v25 = vld [vmem:[%s3096_s5] sm:$0xff]   ;;  %vm599_vm6 = vcmask 1045508   ;;  %vm612_vm8 = vcmask 254976   ;;  %vm995_vm9 = vsmask.f32 4352 }
  0x22   : > { %2290 = vmatprep.subr.bf16.mxu1 %v2581_v1  ;;  %v1069_v26 = vld [vmem:[%s3092_s1] sm:$0xff]  ;;  %v1070_v27 = vld [vmem:[%s3092_s1 + $0x8] sm:$0xff]  ;;  %vm2861_vm7 = vmor %vm598_vm5, %vm599_vm6  ;;  %vm1363_vm10 = vcmask 1045504   ;;  %vm1253_vm11 = vsmask.f32 6400  ;;  %s2584_s17 = smov [#allocation4]  }
  0x23   : > { %2277 = vmatpush3.bf16.msra.mxu0 %v2467_v8  ;;  %1073 = vperm.xlu0 %2456, %v1069_v26   ;;  %v2845_v28 = vld [vmem:[%s3094_s3] ss:$0 sm:$0xff] }
  0x24   : > { %2278 = vmatprep.subr.bf16.mxu0 %v2581_v1  ;;  %1331 = vperm.xlu1 %2457, %v1069_v26   ;;  %v2850_v30 = vld [vmem:[%s3095_s4] ss:$0 sm:$0xff] }
  0x25   : > { %2291 = vmatpush3.bf16.msra.mxu1 %v2461_v7 }
  0x26   : > { %2308 = vmatprep.subr.bf16.mxu1 %v2581_v1 }
  0x27   : > { %2279 = vmatpush3.bf16.msra.mxu0 %v2469_v11  ;;  %1078 = vperm.xlu0 %2456, %v1070_v27  }
  0x28   : > { %2293 = vmatmul.mubr.msk.bf16.vlgmr.msra.gmra.mxu1 %vm527_vm2, %v2463_v10  ;;  %2296 = vmatprep.subr.bf16.mxu0 %v2581_v1 }
  0x29   : > { %2309 = vmatpush3.bf16.msra.mxu1 %v2464_v9  ;;  %2316 = vmatprep.mubr.msk.bf16.mxu1 %vm2582_vm0, %v2581_v1 }
  0x2a   : > { %2310 = vmatprep.subr.bf16.mxu1 %v2581_v1  ;;  %2281 = vmatmul.mubr.msk.bf16.vlgmr.msra.gmra.mxu0 %vm527_vm2, %v2471_v13 }
  0x2b   : > { %2297 = vmatpush3.bf16.msra.mxu0 %v2472_v14  ;;  %2304 = vmatprep.mubr.msk.bf16.mxu0 %vm2582_vm0, %v2581_v1 }
  0x2c   : > { %2298 = vmatprep.subr.bf16.mxu0 %v2581_v1  ;;  %1336 = vperm.xlu1 %2457, %v1070_v27  }
  0x2d   : > { %2311 = vmatpush3.bf16.msra.mxu1 %v2466_v12  ;;  %1603 = vperm.xlu0 %2456, %v1069_v26  }
  0x2e   : > { %2312 = vmatprep.subr.bf16.mxu1 %v2581_v1 }
  0x2f   : > { %2299 = vmatpush3.bf16.msra.mxu0 %v2474_v16 }
  0x30   : > { %2300 = vmatprep.subr.bf16.mxu0 %v2581_v1  ;;  %1608 = vperm.xlu1 %2457, %v1070_v27  }
  0x31   : > { %2313 = vmatpush3.bf16.msra.mxu1 %v2468_v15 }
  0x32   : > { %2314 = vmatprep.subr.bf16.mxu1 %v2581_v1 }
  0x33   : > { %2301 = vmatpush3.bf16.msra.mxu0 %v2475_v18 }
  0x34   : > { %2302 = vmatprep.subr.bf16.mxu0 %v2581_v1 }
  0x35   : > { %2315 = vmatpush3.bf16.msra.mxu1 %v2470_v17 }
  0x36   : > { %2320 = vmatprep.subr.bf16.mxu1 %v2581_v1 }
  0x37   : > { %2303 = vmatpush3.bf16.msra.mxu0 %v2476_v20 }
  0x38   : > { %2317 = vmatmul.mubr.msk.bf16.vlgmr.msra.gmra.mxu1 %vm527_vm2, %v2473_v19  ;;  %2336 = vmatprep.subr.bf16.mxu0 %v2581_v1 }
  0x39   : > { %2324 = vmatprep.mubr.msk.bf16.mxu1 %vm2582_vm0, %v2581_v1  ;;  %2321 = vmatpush3.bf16.msra.mxu1 %v2480_v24 }
  0x3a   : > { %2305 = vmatmul.mubr.msk.bf16.vlgmr.msra.gmra.mxu0 %vm527_vm2, %v2477_v21  ;;  %2322 = vmatprep.subr.bf16.mxu1 %v2581_v1 }
  0x3b   : > { %2340 = vmatprep.mubr.msk.bf16.mxu0 %vm2582_vm0, %v2581_v1  ;;  %2337 = vmatpush3.bf16.msra.mxu0 %v2478_v22 }
  0x3c   : > { %2338 = vmatprep.subr.bf16.mxu0 %v2581_v1 }
  0x3d   : > { %2323 = vmatpush3.bf16.msra.mxu1 %v2483_v25 }
  0x3e   : > { %2328 = vmatprep.subr.bf16.mxu1 %v2581_v1 }
  0x3f   : > { %2339 = vmatpush3.bf16.msra.mxu0 %v2479_v23 }
  0x40   : > { %2352 = vmatprep.subr.bf16.mxu0 %v2581_v1 }
  0xe8   : > { %v690_v29 = vpop.f32.mrf.mxu1 }
  0xe9   : > { %v704_v31 = vmul.f32 %v2845_v28, %v690_v29 }
  0xea   : > { %v2294_v32 = vpop.f32.mrf.mxu1  ;;  %v565_v35 = vpop.f32.mrf.mxu0 }
  0xeb   : > { %v713_v33 = vadd.f32 %v2850_v30, %v704_v31  ;;  %v579_v38 = vmul.f32 %v2845_v28, %v565_v35 }
  0xec   : > { %v693_v34 = vpop.f32.mrf.mxu1  ;;  %v2282_v40 = vpop.f32.mrf.mxu0 }
  0xed   : > { %v715_v36 = vmax.f32 %v713_v33, 0.0  ;;  %v705_v37 = vmul.f32 %v2845_v28, %v693_v34  ;;  %v588_v43 = vadd.f32 %v2850_v30, %v579_v38  ;;  %v2482_v38 = vld [vmem:[%s3096_s5 + $0x48] sm:$0xff]  }
  0xee   : > { %v2295_v39 = vpop.f32.mrf.mxu1  ;;  %v568_v44 = vpop.f32.mrf.mxu0 }
  0xef   : > { %v2210_v41 = vpack.c.bf16 %v715_v36, %v715_v36  ;;  %v714_v42 = vadd.f32 %v2850_v30, %v705_v37  ;;  %v590_v47 = vmax.f32 %v588_v43, 0.0  ;;  %v580_v48 = vmul.f32 %v2845_v28, %v568_v44  ;;  %v2484_v44 = vld [vmem:[%s3096_s5 + $0x40] sm:$0xff]  }
  0xf0   : > { %v2283_v49 = vpop.f32.mrf.mxu0 }
  0xf1   : > { %v723_v45 = vrot.slane %v2210_v41, 6  ;;  %v716_v46 = vmax.f32 %v714_v42, 0.0  ;;  %v2208_v52 = vpack.c.bf16 %v590_v47, %v590_v47  ;;  %v589_v53 = vadd.f32 %v2850_v30, %v580_v48 }
  0xf3   : > { %v724_v50 = vrot.slane %v723_v45, 4  ;;  %732 = vst.msk [vmem:[#allocation2 + $0x18] sm:$0xc] %vm609_vm4, %v723_v45  ;;  %v2211_v51 = vpack.c.bf16 %v716_v46, %v716_v46  ;;  %v601_v56 = vrot.slane %v2208_v52, 6  ;;  %v591_v57 = vmax.f32 %v589_v53, 0.0 }
  0xf5   : > { %v725_v55 = vrot.slane %v2211_v51, 6  ;;  %v602_v60 = vrot.slane %v601_v56, 4  ;;  %610 = vst.msk [vmem:[#allocation2 + $0x4] sm:$0xc] %vm609_vm4, %v601_v56  ;;  %v2209_v61 = vpack.c.bf16 %v591_v57, %v591_v57 }
  0xf7   : > { %v726_v58 = vsel %vm2861_vm7, %v724_v50, %v725_v55  ;;  %v727_v59 = vrot.slane %v725_v55, 4  ;;  %v603_v0 = vrot.slane %v2209_v61, 6 }
  0xf8   : > { %733 = vst.msk [vmem:[#allocation2 + $0x1c] sm:$0xf] %vm467_vm1, %v726_v58  ;;  %v932_v62 = vpop.f32.mrf.mxu1 }
  0xf9   : > { %734 = vst.msk [vmem:[#allocation2 + $0x20] sm:$0x3] %vm612_vm8, %v727_v59  ;;  %v946_v63 = vmul.f32 %v2845_v28, %v932_v62  ;;  %v604_v4 = vsel %vm2861_vm7, %v602_v60, %v603_v0  ;;  %v605_v5 = vrot.slane %v603_v0, 4  ;;  %v2487_v59 = vld [vmem:[%s3096_s5 + $0x18] sm:$0xff]   ;;  %v2490_v62 = vld [vmem:[%s3096_s5 + $0x68] sm:$0xff]  }
  0xfa   : > { %v2318_v2 = vpop.f32.mrf.mxu1  ;;  %611 = vst.msk [vmem:[#allocation2 + $0x8] sm:$0xf] %vm467_vm1, %v604_v4  ;;  %v811_v7 = vpop.f32.mrf.mxu0 }
  0xfb   : > { %v955_v3 = vadd.f32 %v2850_v30, %v946_v63  ;;  %613 = vst.msk [vmem:[#allocation2 + $0xc] sm:$0x3] %vm612_vm8, %v605_v5  ;;  %v825_v10 = vmul.f32 %v2845_v28, %v811_v7 }
  0xfc   : > { %v935_v6 = vpop.f32.mrf.mxu1  ;;  %v2306_v12 = vpop.f32.mrf.mxu0 }
  0xfd   : > { %v957_v8 = vmax.f32 %v955_v3, 0.0  ;;  %v947_v9 = vmul.f32 %v2845_v28, %v935_v6  ;;  %v834_v15 = vadd.f32 %v2850_v30, %v825_v10 }
  0xfe   : > { %v2319_v11 = vpop.f32.mrf.mxu1  ;;  %v814_v16 = vpop.f32.mrf.mxu0 }
  0xff   : > { %v2214_v13 = vpack.c.bf16 %v957_v8, %v957_v8  ;;  %v956_v14 = vadd.f32 %v2850_v30, %v947_v9  ;;  %v836_v19 = vmax.f32 %v834_v15, 0.0  ;;  %v826_v20 = vmul.f32 %v2845_v28, %v814_v16  ;;  %v2500_v2 = vld [vmem:[#allocation2 + $0x18] sm:$0xfe]   ;;  %v2491_v8 = vld [vmem:[%s3096_s5 + $0x10] sm:$0xff]   ;;  %v2492_v9 = vld [vmem:[%s3096_s5 + $0x60] sm:$0xff]  }
 0x100   : > { %v2307_v21 = vpop.f32.mrf.mxu0  ;;  %v2501_v3 = vld [vmem:[#allocation2 + $0x20] ss:$0 sps:$4 sm:$0x33]   ;;  %v1255_v10 = vshrl.u32 %v2500_v2, 16  ;;  %v1258_v11 = vshll.u32 %v2500_v2, 16 }
 0x101   : > { %v965_v17 = vrot.slane %v2214_v13, 6  ;;  %v958_v18 = vmax.f32 %v956_v14, 0.0  ;;  %v2212_v23 = vpack.c.bf16 %v836_v19, %v836_v19  ;;  %v835_v24 = vadd.f32 %v2850_v30, %v826_v20  ;;  %v2488_v41 = vld [vmem:[#allocation2 + $0x4] sm:$0xfc]  }
 0x102   : > { %v2489_v40 = vld [vmem:[#allocation2 + $0xc] ss:$0 sps:$4 sm:$0x33]   ;;  %v1364_v51 = vrot.slane %v2488_v41, 2  ;;  %v1263_v12 = vshrl.u32 %v2501_v3, 16  ;;  %v1266_v15 = vshll.u32 %v2501_v3, 16 }
 0x103   : > { %974 = vst.msk [vmem:[#allocation2 + $0x40] sm:$0xc] %vm609_vm4, %v965_v17  ;;  %v2215_v22 = vpack.c.bf16 %v958_v18, %v958_v18  ;;  %v966_v25 = vrot.slane %v965_v17, 4  ;;  %v844_v27 = vrot.slane %v2212_v23, 6  ;;  %v837_v29 = vmax.f32 %v835_v24, 0.0  ;;  %v2494_v17 = vld [vmem:[%s3096_s5 + $0x38] sm:$0xff]  }
 0x104   : > { %v1365_v52 = vrot.slane %v2489_v40, 2  ;;  %v2497_v18 = vld [vmem:[%s3096_s5 + $0x88] sm:$0xff]   ;;  %v1257_v19 = vrot.slane %v1255_v10, 1  ;;  %v1260_v20 = vrot.slane %v1258_v11, 2  ;;  %v1265_v21 = vrot.slane %v1263_v12, 1  ;;  %v2508_v40 = vld [vmem:[%s3096_s5 + $0x78] sm:$0xff]  }
 0x105   : > { %v967_v26 = vrot.slane %v2215_v22, 6  ;;  %v845_v33 = vrot.slane %v844_v27, 4  ;;  %853 = vst.msk [vmem:[#allocation2 + $0x2c] sm:$0xc] %vm609_vm4, %v844_v27  ;;  %v2213_v34 = vpack.c.bf16 %v837_v29, %v837_v29  ;;  %v1268_v23 = vrot.slane %v1266_v15, 2  ;;  %v2499_v27 = vld [vmem:[%s3096_s5 + $0x80] sm:$0xff]  }
 0x106   : > { %v1366_v63 = vsel %vm1363_vm10, %v1364_v51, %v1365_v52  ;;  %v1261_v29 = vor.u32 %v1260_v20, %v1257_v19  ;;  %v2518_v51 = vld [vmem:[%s3099_s8] sm:$0xff]   ;;  %v2514_v52 = vld [vmem:[%s3102_s11 + $0x8] sm:$0xff]  }
 0x107   : > { %v968_v31 = vsel %vm2861_vm7, %v966_v25, %v967_v26  ;;  %v969_v32 = vrot.slane %v967_v26, 4  ;;  %v846_v28 = vrot.slane %v2213_v34, 6  ;;  %v2498_v26 = vld [vmem:[%s3096_s5 + $0x30] sm:$0xff]   ;;  %v2502_v34 = vld [vmem:[%s3096_s5 + $0x58] sm:$0xff]  }
 0x108   : > { %975 = vst.msk [vmem:[#allocation2 + $0x44] sm:$0xf] %vm467_vm1, %v968_v31  ;;  %v1269_v31 = vor.u32 %v1268_v23, %v1265_v21 }
 0x109   : > { %976 = vst.msk [vmem:[#allocation2 + $0x48] sm:$0x3] %vm612_vm8, %v969_v32  ;;  %v847_v30 = vsel %vm2861_vm7, %v845_v33, %v846_v28  ;;  %v848_v36 = vrot.slane %v846_v28, 4 }
 0x10a   : > { %v2485_v35 = vld [vmem:[#allocation2 + $0x3c] sm:$0xf8]   ;;  %854 = vst.msk [vmem:[#allocation2 + $0x30] sm:$0xf] %vm467_vm1, %v847_v30  ;;  %v1270_v28 = vsel %vm1253_vm11, %v1261_v29, %v1269_v31 }
 0x10b   : > { %v997_v37 = vshrl.u32 %v2485_v35, 16  ;;  %855 = vst.msk [vmem:[#allocation2 + $0x34] sm:$0x3] %vm612_vm8, %v848_v36  ;;  %v1000_v39 = vshll.u32 %v2485_v35, 16  ;;  %v2506_v30 = vld [vmem:[#allocation2 + $0x18] sm:$0xfc]  }
 0x10c   : > { %v2507_v36 = vld [vmem:[#allocation2 + $0x20] ss:$0 sps:$4 sm:$0x33]  }
 0x10d   : > { %v999_v43 = vrot.slane %v997_v37, 3  ;;  %v1002_v46 = vrot.slane %v1000_v39, 4  ;;  %v2505_v37 = vld [vmem:[%s3096_s5 + $0x50] sm:$0xff]   ;;  %v1446_v39 = vrot.slane %v2507_v36, 2 }
 0x10f   : > { %v2481_v42 = vld [vmem:[#allocation2 + $0x40] sm:$0xff]   ;;  %v1003_v60 = vor.u32 %v1002_v46, %v999_v43 }
 0x110   : > { %v2486_v45 = vld [vmem:[#allocation2 + $0x44] ss:$0 sps:$4 sm:$0xff]   ;;  %2341 = vmatmul.mubr.msk.bf16.vlgmr.msra.gmra.mxu0 %vm977_vm3, %v2481_v42  ;;  %v2496_v48 = vld [vmem:[#allocation2 + $0x48] ss:$0 sps:$4 sm:$0x33]  }
 0x111   : > { %v2495_v47 = vld [vmem:[#allocation2 + $0x40] sm:$0xfe]   ;;  %2353 = vmatpush3.bf16.msra.mxu0 %v2482_v38  ;;  %v1005_v49 = vshrl.u32 %v2486_v45, 16  ;;  %v1008_v50 = vshll.u32 %v2486_v45, 16  ;;  %2356 = vmatprep.mubr.msk.bf16.mxu0 %vm2582_vm0, %v2581_v1  ;;  %v1535_v57 = vshrl.u32 %v2496_v48, 16  ;;  %v1538_v58 = vshll.u32 %v2496_v48, 16 }
 0x112   : > { %2354 = vmatprep.subr.bf16.mxu0 %v2581_v1  ;;  %v1527_v53 = vshrl.u32 %v2495_v47, 16  ;;  %v1530_v54 = vshll.u32 %v2495_v47, 16  ;;  %v2493_v16 = vld [vmem:[#allocation2 + $0x2c] sm:$0xff]   ;;  %v2503_v24 = vld [vmem:[#allocation2 + $0x40] sm:$0xfc]   ;;  %v1445_v38 = vrot.slane %v2506_v30, 2 }
 0x113   : > { %v1007_v55 = vrot.slane %v1005_v49, 3  ;;  %v1010_v56 = vrot.slane %v1008_v50, 4  ;;  %v1537_v6 = vrot.slane %v1535_v57, 1  ;;  %v1540_v7 = vrot.slane %v1538_v58, 2  ;;  %v2510_v42 = vld [vmem:[#allocation2 + $0x2c] sm:$0xfc]   ;;  %v1074_v58 = vpop.permute.xlu0 %1073 }
 0x114   : > { %v1529_v0 = vrot.slane %v1527_v53, 1  ;;  %v1532_v5 = vrot.slane %v1530_v54, 2  ;;  %v2504_v25 = vld [vmem:[#allocation2 + $0x48] ss:$0 sps:$4 sm:$0x33]   ;;  %v1716_v32 = vrot.slane %v2503_v24, 2  ;;  %v1447_v41 = vsel %vm1363_vm10, %v1445_v38, %v1446_v39 }
 0x115   : > { %2355 = vmatpush3.bf16.msra.mxu0 %v2484_v44  ;;  %v1011_v61 = vor.u32 %v1010_v56, %v1007_v55  ;;  %v1541_v14 = vor.u32 %v1540_v7, %v1537_v6  ;;  %v1717_v33 = vrot.slane %v2504_v25, 2  ;;  %v2511_v43 = vld [vmem:[#allocation2 + $0x34] ss:$0 sps:$4 sm:$0x33]   ;;  %v1635_v45 = vrot.slane %v2510_v42, 2  ;;  %v2512_v48 = vld [vmem:[%s3102_s11 + $0x18] sm:$0xff]  }
 0x116   : > { %2368 = vmatprep.subr.bf16.mxu0 %v2581_v1  ;;  %v1533_v13 = vor.u32 %v1532_v5, %v1529_v0  ;;  %v2509_v44 = vld [vmem:[%s3096_s5 + $0x70] sm:$0xff]   ;;  %v1636_v46 = vrot.slane %v2511_v43, 2  ;;  %v2516_v50 = vld [vmem:[%s3099_s8 + $0x8] sm:$0xff]   ;;  %v2515_v53 = vld [vmem:[%s3102_s11] sm:$0xff]  }
 0x117   : > { %v1012_v4 = vsel %vm995_vm9, %v1003_v60, %v1011_v61  ;;  %v1718_v35 = vsel %vm1363_vm10, %v1716_v32, %v1717_v33  ;;  %v2513_v49 = vld [vmem:[%s3102_s11 + $0x10] sm:$0xff]   ;;  %v2517_v54 = vld [vmem:[%s2738_s18] sm:$0xff]   ;;  %v1079_v3 = vpop.permute.xlu0 %1078  ;;  %v1084_v6 = vld [vmem:[#allocation3 + $0x8] sm:$0xff]  ;;  %s458_s18 = sand.u32 1, %s2571_s30  }
 0x118   : > { %2325 = vmatmul.mubr.msk.bf16.vlgmr.msra.gmra.mxu1 %vm977_vm3, %v1012_v4  ;;  %2357 = vmatmul.mubr.msk.bf16.vlgmr.msra.gmra.mxu0 %vm977_vm3, %v1366_v63  ;;  %v1542_v22 = vsel %vm1253_vm11, %v1533_v13, %v1541_v14  ;;  %v1637_v47 = vsel %vm1363_vm10, %v1635_v45, %v1636_v46  ;;  %v1083_v61 = vld [vmem:[#allocation3] sm:$0xff]  ;;  %s2069_s28 = sshll.u32 %s458_s18, 4  ;;  %s3051_s26 = scalar_lea.sflag [#allocation5], %s458_s18 }
 0x119   : > { %2329 = vmatpush3.bf16.msra.mxu1 %v2487_v59  ;;  %2369 = vmatpush3.bf16.msra.mxu0 %v2490_v62  ;;  %s460_s15 = scalar_lea.vmem [#allocation4], %s2069_s28  ;;  %s2523_s28 = sshll.u32 %s2584_s17, 4  ;;  %s2524_s28 = int_to_ptr.vmem [resolvable:$false] %s2523_s28 }
 0x11a   : > { %2330 = vmatprep.subr.bf16.mxu1 %v2581_v1  ;;  %2370 = vmatprep.subr.bf16.mxu0 %v2581_v1  ;;  %s2003_s19 = sshll.u32 %s460_s15, 4  ;;  %s2525_s20 = scalar_lea.vmem %s2524_s28, 512  ;;  %s3049_s19 = int_to_ptr.vmem [resolvable:$true] %s2003_s19 }
 0x11b   : > { %2332 = vmatprep.mubr.msk.bf16.mxu1 %vm2582_vm0, %v2581_v1  ;;  %2372 = vmatprep.mubr.msk.bf16.mxu0 %vm2582_vm0, %v2581_v1  ;;  %s2519_s27 = scalar_lea.vmem %s3049_s19, 256  ;;  %p2526_p0 = scmp.lt.s32.totalorder %s3049_s19, %s2524_s28 }
 0x11c   : > { %p2520_p11 = scmp.ne.s32.totalorder %s3049_s19, %s2519_s27  ;;  %p2527_p1 = scmp.lt.s32.totalorder %s2525_s20, %s2519_s27 }
 0x11d   : > { %2331 = vmatpush3.bf16.msra.mxu1 %v2491_v8  ;;  %2371 = vmatpush3.bf16.msra.mxu0 %v2492_v9 }
 0x11e   : > { %2344 = vmatprep.subr.bf16.mxu1 %v2581_v1  ;;  %2384 = vmatprep.subr.bf16.mxu0 %v2581_v1  ;;  %p2521_p12 = pnand %p2520_p11, %p2700_p5  ;;  %p2528_p2 = por %p2527_p1, %p2526_p0 }
 0x120   : > { %2333 = vmatmul.mubr.msk.bf16.vlgmr.msra.gmra.mxu1 %vm977_vm3, %v2493_v16  ;;  %2373 = vmatmul.mubr.msk.bf16.vlgmr.msra.gmra.mxu0 %vm977_vm3, %v1542_v22  ;;  %p2522_p13 = pneg %p2521_p12 }
 0x121   : > { %2345 = vmatpush3.bf16.msra.mxu1 %v2494_v17  ;;  %2385 = vmatpush3.bf16.msra.mxu0 %v2497_v18 }
 0x122   : > { %2346 = vmatprep.subr.bf16.mxu1 %v2581_v1  ;;  %2386 = vmatprep.subr.bf16.mxu0 %v2581_v1  ;;  %p2529_p3 = pnand %p2528_p2, %p2522_p13 }
 0x123   : > { %2348 = vmatprep.mubr.msk.bf16.mxu1 %vm2582_vm0, %v2581_v1  ;;  %2388 = vmatprep.mubr.msk.bf16.mxu0 %vm2582_vm0, %v2581_v1 }
 0x125   : > { %2347 = vmatpush3.bf16.msra.mxu1 %v2498_v26  ;;  %2387 = vmatpush3.bf16.msra.mxu0 %v2499_v27 }
 0x126   : > { %2360 = vmatprep.subr.bf16.mxu1 %v2581_v1  ;;  %2400 = vmatprep.subr.bf16.mxu0 %v2581_v1 }
 0x128   : > { %2349 = vmatmul.mubr.msk.bf16.vlgmr.msra.gmra.mxu1 %vm977_vm3, %v1270_v28  ;;  %2389 = vmatmul.mubr.msk.bf16.vlgmr.msra.gmra.mxu0 %vm977_vm3, %v1718_v35 }
 0x129   : > { %2361 = vmatpush3.bf16.msra.mxu1 %v2502_v34  ;;  %2364 = vmatprep.mubr.msk.bf16.mxu1 %vm2582_vm0, %v2581_v1 }
 0x12a   : > { %2362 = vmatprep.subr.bf16.mxu1 %v2581_v1  ;;  %2408 = vmatprep.mubr.msk.bf16.mxu0 %vm2582_vm0, %v2581_v1 }
 0x12b   : > { %2401 = vmatpush3.bf16.msra.mxu0 %v2512_v48 }
 0x12c   : > { %2402 = vmatprep.subr.bf16.mxu0 %v2581_v1 }
 0x12d   : > { %2363 = vmatpush3.bf16.msra.mxu1 %v2505_v37  ;;  %v1332_v37 = vpop.permute.xlu1 %1331 }
 0x12e   : > { %2376 = vmatprep.subr.bf16.mxu1 %v2581_v1 }
 0x12f   : > { %2403 = vmatpush3.bf16.msra.mxu0 %v2513_v49 }
 0x130   : > { %2365 = vmatmul.mubr.msk.bf16.vlgmr.msra.gmra.mxu1 %vm977_vm3, %v1447_v41  ;;  %2404 = vmatprep.subr.bf16.mxu0 %v2581_v1 }
 0x131   : > { %2377 = vmatpush3.bf16.msra.mxu1 %v2508_v40  ;;  %2380 = vmatprep.mubr.msk.bf16.mxu1 %vm2582_vm0, %v2581_v1 }
 0x132   : > { %2378 = vmatprep.subr.bf16.mxu1 %v2581_v1 }
 0x133   : > { %2405 = vmatpush3.bf16.msra.mxu0 %v2514_v52 }
 0x134   : > { %2406 = vmatprep.subr.bf16.mxu0 %v2581_v1 }
 0x135   : > { %2379 = vmatpush3.bf16.msra.mxu1 %v2509_v44  ;;  %v1337_v44 = vpop.permute.xlu1 %1336 }
 0x136   : > { %2392 = vmatprep.subr.bf16.mxu1 %v2581_v1 }
 0x137   : > { %2407 = vmatpush3.bf16.msra.mxu0 %v2515_v53 }
 0x138   : > { %2381 = vmatmul.mubr.msk.bf16.vlgmr.msra.gmra.mxu1 %vm977_vm3, %v1637_v47 }
 0x139   : > { %2396 = vmatprep.mubr.msk.bf16.mxu1 %vm2582_vm0, %v2581_v1  ;;  %2393 = vmatpush3.bf16.msra.mxu1 %v2516_v50 }
 0x13a   : > { %2394 = vmatprep.subr.bf16.mxu1 %v2581_v1  ;;  %2409 = vmatmul.mubr.msk.bf16.vlgmr.msra.gmra.mxu0 %vm527_vm2, %v2517_v54 }
 0x13d   : > { %2395 = vmatpush3.bf16.msra.mxu1 %v2518_v51 }
 0x1d0   : > { %v1224_v55 = vpop.f32.mrf.mxu0 }
 0x1d2   : > { %v2342_v56 = vpop.f32.mrf.mxu0 }
 0x1d4   : > { %v1227_v57 = vpop.f32.mrf.mxu0 }
 0x1d6   : > { %v2343_v59 = vpop.f32.mrf.mxu0 }
 0x1d7   : > { %v1604_v59 = vpop.permute.xlu0 %1603 }
 0x1d8   : > { %v1062_v60 = vpop.f32.mrf.mxu1  ;;  %v1416_v62 = vpop.f32.mrf.mxu0 }
 0x1d9   : > { %v1081_v63 = vmul.f32 %v1074_v58, %v1062_v60 }
 0x1da   : > { %v2326_v0 = vpop.f32.mrf.mxu1  ;;  %v2358_v2 = vpop.f32.mrf.mxu0 }
 0x1db   : > { %v1085_v4 = vadd.f32 %v1083_v61, %v1081_v63  ;;  %v1609_v61 = vpop.permute.xlu1 %1608 }
 0x1dc   : > { %v1065_v5 = vpop.f32.mrf.mxu1  ;;  %v1419_v1 = vpop.f32.mrf.mxu0 }
 0x1dd   : > { %1087 = vst.msk [vmem:[#allocation3] sm:$0xff] %vm977_vm3, %v1085_v4  ;;  %v1082_v7 = vmul.f32 %v1079_v3, %v1065_v5 }
 0x1de   : > { %v2327_v8 = vpop.f32.mrf.mxu1  ;;  %v2359_v9 = vpop.f32.mrf.mxu0 }
 0x1df   : > { %v1086_v10 = vadd.f32 %v1084_v6, %v1082_v7 }
 0x1e0   : > { %v1150_v11 = vpop.f32.mrf.mxu1  ;;  %v1592_v12 = vpop.f32.mrf.mxu0 }
 0x1e1   : > { %1088 = vst.msk [vmem:[#allocation3 + $0x8] sm:$0xff] %vm977_vm3, %v1086_v10  ;;  %v1611_v60 = vmul.f32 %v1604_v59, %v1592_v12 }
 0x1e2   : > { %v2334_v13 = vpop.f32.mrf.mxu1  ;;  %v2374_v14 = vpop.f32.mrf.mxu0 }
 0x1e3   : > { %v2188_v14 = vld [vmem:[%s3098_s7] ss:$0 sm:$0xff] }
 0x1e4   : > { %v1157_v15 = vld [vmem:[#allocation3] sm:$0xff]  ;;  %v1153_v16 = vpop.f32.mrf.mxu1  ;;  %v1595_v17 = vpop.f32.mrf.mxu0 }
 0x1e5   : > { %v1159_v18 = vadd.f32 %v1157_v15, %v1150_v11  ;;  %v2187_v11 = vld [vmem:[%s3097_s6] ss:$0 sm:$0xff] }
 0x1e6   : > { %v2335_v19 = vpop.f32.mrf.mxu1  ;;  %v2375_v20 = vpop.f32.mrf.mxu0 }
 0x1e7   : > { %1161 = vst.msk [vmem:[#allocation3] sm:$0xff] %vm977_vm3, %v1159_v18 }
 0x1e8   : > { %v1158_v21 = vld [vmem:[#allocation3 + $0x8] sm:$0xff]  ;;  %v1320_v22 = vpop.f32.mrf.mxu1  ;;  %v1768_v23 = vpop.f32.mrf.mxu0 }
 0x1e9   : > { %v1160_v24 = vadd.f32 %v1158_v21, %v1153_v16  ;;  %v1339_v40 = vmul.f32 %v1332_v37, %v1320_v22 }
 0x1ea   : > { %v2350_v25 = vpop.f32.mrf.mxu1  ;;  %v2390_v26 = vpop.f32.mrf.mxu0 }
 0x1eb   : > { %1162 = vst.msk [vmem:[#allocation3 + $0x8] sm:$0xff] %vm977_vm3, %v1160_v24  ;;  %v2200_v26 = vld [vmem:[%s3103_s12] ss:$0 sm:$0xff] }
 0x1ec   : > { %v1323_v27 = vpop.f32.mrf.mxu1  ;;  %v1771_v29 = vpop.f32.mrf.mxu0 }
 0x1ed   : > { %v1340_v46 = vmul.f32 %v1337_v44, %v1323_v27 }
 0x1ee   : > { %v1231_v31 = vld [vmem:[#allocation3] sm:$0xff]  ;;  %v2351_v32 = vpop.f32.mrf.mxu1  ;;  %v2391_v33 = vpop.f32.mrf.mxu0 }
 0x1ef   : > { %v1233_v34 = vadd.f32 %v1231_v31, %v1224_v55  ;;  %v2192_v31 = vld [vmem:[%s3100_s9] ss:$0 sm:$0xff] }
 0x1f0   : > { %v1497_v28 = vpop.f32.mrf.mxu1  ;;  %v2193_v33 = vld [vmem:[%s3101_s10] ss:$0 sm:$0xff] }
 0x1f1   : > { %1235 = vst.msk [vmem:[#allocation3] sm:$0xff] %vm977_vm3, %v1233_v34 }
 0x1f2   : > { %v1232_v35 = vld [vmem:[#allocation3 + $0x8] sm:$0xff]  ;;  %v2366_v30 = vpop.f32.mrf.mxu1 }
 0x1f3   : > { %v1234_v36 = vadd.f32 %v1232_v35, %v1227_v57 }
 0x1f4   : > { %v1500_v38 = vpop.f32.mrf.mxu1 }
 0x1f5   : > { %1236 = vst.msk [vmem:[#allocation3 + $0x8] sm:$0xff] %vm977_vm3, %v1234_v36 }
 0x1f6   : > { %v2367_v39 = vpop.f32.mrf.mxu1 }
 0x1f8   : > { %v1341_v41 = vld [vmem:[#allocation3] sm:$0xff]  ;;  %v1687_v42 = vpop.f32.mrf.mxu1 }
 0x1f9   : > { %v1343_v43 = vadd.f32 %v1341_v41, %v1339_v40 }
 0x1fa   : > { %v2382_v45 = vpop.f32.mrf.mxu1  ;;  %v1958_v22 = vpop.f32.mrf.mxu0 }
 0x1fb   : > { %1345 = vst.msk [vmem:[#allocation3] sm:$0xff] %vm977_vm3, %v1343_v43  ;;  %v1972_v27 = vmul.f32 %v2200_v26, %v1958_v22 }
 0x1fc   : > { %v1342_v47 = vld [vmem:[#allocation3 + $0x8] sm:$0xff]  ;;  %v1690_v48 = vpop.f32.mrf.mxu1 }
 0x1fd   : > { %v1344_v49 = vadd.f32 %v1342_v47, %v1340_v46 }
 0x1fe   : > { %v2383_v50 = vpop.f32.mrf.mxu1 }
 0x1ff   : > { %1346 = vst.msk [vmem:[#allocation3 + $0x8] sm:$0xff] %vm977_vm3, %v1344_v49 }
 0x202   : > { %v1423_v51 = vld [vmem:[#allocation3] sm:$0xff] }
 0x203   : > { %v1425_v52 = vadd.f32 %v1423_v51, %v1416_v62  ;;  %v1612_v62 = vmul.f32 %v1609_v61, %v1595_v17 }
 0x205   : > { %1427 = vst.msk [vmem:[#allocation3] sm:$0xff] %vm977_vm3, %v1425_v52 }
 0x206   : > { %v1424_v53 = vld [vmem:[#allocation3 + $0x8] sm:$0xff] }
 0x207   : > { %v1426_v54 = vadd.f32 %v1424_v53, %v1419_v1 }
 0x209   : > { %1428 = vst.msk [vmem:[#allocation3 + $0x8] sm:$0xff] %vm977_vm3, %v1426_v54 }
 0x20c   : > { %v1504_v55 = vld [vmem:[#allocation3] sm:$0xff] }
 0x20d   : > { %v1506_v56 = vadd.f32 %v1504_v55, %v1497_v28 }
 0x20f   : > { %1508 = vst.msk [vmem:[#allocation3] sm:$0xff] %vm977_vm3, %v1506_v56 }
 0x210   : > { %v1505_v57 = vld [vmem:[#allocation3 + $0x8] sm:$0xff] }
 0x211   : > { %v1507_v58 = vadd.f32 %v1505_v57, %v1500_v38 }
 0x213   : > { %1509 = vst.msk [vmem:[#allocation3 + $0x8] sm:$0xff] %vm977_vm3, %v1507_v58 }
 0x216   : > { %v1613_v63 = vld [vmem:[#allocation3] sm:$0xff] }
 0x217   : > { %v1615_v0 = vadd.f32 %v1613_v63, %v1611_v60 }
 0x219   : > { %1617 = vst.msk [vmem:[#allocation3] sm:$0xff] %vm977_vm3, %v1615_v0 }
 0x21a   : > { %v1614_v2 = vld [vmem:[#allocation3 + $0x8] sm:$0xff] }
 0x21b   : > { %v1616_v3 = vadd.f32 %v1614_v2, %v1612_v62 }
 0x21d   : > { %1618 = vst.msk [vmem:[#allocation3 + $0x8] sm:$0xff] %vm977_vm3, %v1616_v3 }
 0x220   : > { %v1694_v4 = vld [vmem:[#allocation3] sm:$0xff] }
 0x221   : > { %v1696_v5 = vadd.f32 %v1694_v4, %v1687_v42 }
 0x223   : > { %1698 = vst.msk [vmem:[#allocation3] sm:$0xff] %vm977_vm3, %v1696_v5 }
 0x224   : > { %v1695_v6 = vld [vmem:[#allocation3 + $0x8] sm:$0xff] }
 0x225   : > { %v1697_v1 = vadd.f32 %v1695_v6, %v1690_v48 }
 0x227   : > { %1699 = vst.msk [vmem:[#allocation3 + $0x8] sm:$0xff] %vm977_vm3, %v1697_v1 }
 0x22a   : > { %v1775_v7 = vld [vmem:[#allocation3] sm:$0xff] }
 0x22b   : > { %v1777_v8 = vadd.f32 %v1775_v7, %v1768_v23  ;;  %v2410_v23 = vpop.f32.mrf.mxu0 }
 0x22d   : > { %1779 = vst.msk [vmem:[#allocation3] sm:$0xff] %vm977_vm3, %v1777_v8  ;;  %v1961_v24 = vpop.f32.mrf.mxu0 }
 0x22e   : > { %v1776_v9 = vld [vmem:[#allocation3 + $0x8] sm:$0xff]  ;;  %v1973_v30 = vmul.f32 %v2200_v26, %v1961_v24 }
 0x22f   : > { %v1778_v10 = vadd.f32 %v1776_v9, %v1771_v29  ;;  %v2411_v25 = vpop.f32.mrf.mxu0  ;;  %v2201_v29 = vld [vmem:[%s3104_s13] ss:$0 sm:$0xff] }
 0x230   : > { %v1981_v34 = vadd.f32 %v2201_v29, %v1972_v27  ;;  %v1982_v41 = vadd.f32 %v2201_v29, %v1973_v30 }
 0x231   : > { %1780 = vst.msk [vmem:[#allocation3 + $0x8] sm:$0xff] %vm977_vm3, %v1778_v10 }
 0x234   : > { %v1781_v12 = vld [vmem:[#allocation3] sm:$0xff] }
 0x235   : > { %v1790_v13 = vmul.f32 %v2187_v11, %v1781_v12 }
 0x237   : > { %v1799_v17 = vadd.f32 %v2188_v14, %v1790_v13 }
 0x238   : > { %v1782_v15 = vld [vmem:[#allocation3 + $0x8] sm:$0xff] }
 0x239   : > { %v1791_v16 = vmul.f32 %v2187_v11, %v1782_v15  ;;  %v1801_v19 = vmax.f32 %v1799_v17, 0.0 }
 0x23b   : > { %v1800_v18 = vadd.f32 %v2188_v14, %v1791_v16 }
 0x23d   : > { %v1802_v20 = vmax.f32 %v1800_v18, 0.0 }
 0x23f   : > { %v1803_v21 = vpack.c.bf16 %v1802_v20, %v1801_v19 }
 0x241   : > { %2397 = vmatmul.mubr.msk.bf16.vlgmr.msra.gmra.mxu1 %vm977_vm3, %v1803_v21 }
 0x301   : > { %v1857_v32 = vpop.f32.mrf.mxu1 }
 0x302   : > { %v1871_v28 = vmul.f32 %v2192_v31, %v1857_v32 }
 0x303   : > { %v2398_v35 = vpop.f32.mrf.mxu1 }
 0x304   : > { %v1880_v36 = vadd.f32 %v2193_v33, %v1871_v28 }
 0x305   : > { %v1860_v37 = vpop.f32.mrf.mxu1 }
 0x306   : > { %v1983_v38 = vadd.f32 %v1981_v34, %v1880_v36  ;;  %v1872_v39 = vmul.f32 %v2192_v31, %v1860_v37 }
 0x307   : > { %v2399_v40 = vpop.f32.mrf.mxu1 }
 0x308   : > { %v1985_v42 = vmax.f32 %v1983_v38, 0.0  ;;  %v1881_v43 = vadd.f32 %v2193_v33, %v1872_v39 }
 0x30a   : > { %1987 = vst [vmem:[%s460_s15] sm:$0xff] %v1985_v42  ;;  %v1984_v44 = vadd.f32 %v1982_v41, %v1881_v43 }
 0x30c   : > { %v1986_v45 = vmax.f32 %v1984_v44, 0.0 }
 0x30e   : > { %1988 = vst [vmem:[%s460_s15 + $0x8] sm:$0xff] %v1986_v45 }
 0x30f   : > { %2532 = shalt.err (!%p2529_p3)
}
 0x310   : > { %s2533_s18 = scalar_lea.hbm %s3047_s25, 256  ;;  %s2537_s21 = scalar_lea.hbm %s3105_s14, 512 }
 0x311   : > { %p2534_p4 = scmp.ne.s32.totalorder %s3047_s25, %s2533_s18  ;;  %p2538_p9 = scmp.lt.s32.totalorder %s3047_s25, %s3105_s14 }
 0x312   : > { %p2539_p10 = scmp.lt.s32.totalorder %s2537_s21, %s2533_s18 }
 0x313   : > { %p2535_p7 = pnand %p2534_p4, %p2700_p5 }
 0x314   : > { %p2540_p11 = por %p2539_p10, %p2538_p9 }
 0x315   : > { %p2536_p8 = pneg %p2535_p7 }
 0x317   : > { %p2541_p12 = pnand %p2540_p11, %p2536_p8 }
 0x319   : > { %2544 = shalt.err (!%p2541_p12)
}
 0x31a   : > { %s2585_s27 = smov 128   ;;  %s2586_s28 = smov 8  }
 0x31b   : > { %2412 = dma.vmem_to_hbm [thread:$0]  (%p2700_p5), %s3049_s19, 256, %s3047_s25, %s3051_s26, %s2585_s27, %s2585_s27, %s2586_s28  }
 0x31c PF: > { %p2418_p13 = scmp.ge.s32.totalorder %s2579_s16, 2  ;;  %s2018_s20 = sand.u32 1, %s2567_s29  }
 0x31d   : > { %s2019_s0 = scalar_lea.sflag [#allocation5], %s2018_s20 }
 0x31e   : > { %p2415_p0 = pnand %p2418_p13, %p2704_p6 }
 0x320   : > { %p2416_p1 = pneg %p2415_p0 }
 0x322   : > { %2562 = dma.done.wait (%p2416_p1), %s2019_s0, 256  }
 0x323   : > { %2564 = vsyncadd (%p2416_p1), %s2019_s0, 4294967040  ;;  %s3118_s16 = sld [smem:[#allocation8_spill]]  ;;  %s3121_s29 = smov %s2571_s30 }
 0x324   : > { %s3119_s18 = sld [smem:[#allocation7_spill]] }
 0x325   : > { %s3120_s15 = sld [smem:[#allocation9_spill]] }
 0x329   : > { %p24_p2 = scmp.ge.s32.totalorder %s3118_s16, 4  }
 0x32a   : > { %s3122_s30 = smov %s3119_s18 }
 0x32b   :  { %26 = sbr.rel (!%p24_p2) target bundleno = 5 (0x5), region = 122 }
 0x330   :  { %2024 = vsyncpa [#allocation5], 1 }
 0x331   :  { %2026 = vsyncpa [#allocation5 + $0x1], 1 }

</bundles_post_ra>
